<compile_context>
chip_gen: v7x
topology: tpu7x:2x2x1
jax: 0.10.0
libtpu: 0.0.40
codegen_flags: <defaults>
</compile_context>

<pallas_src>
import functools

import jax
import jax.numpy as jnp
from jax.experimental import pallas as pl
from jax.experimental.pallas import tpu as pltpu

VMEM_LIMIT = 16 * 1024 * 1024   # right-sized; blocks here need only a few MiB

IMG = 64      # stand-in for the 1024x1024 SAM input resolution
LOWRES = 16   # stand-in for the 256x256 low-res SAM mask
PATCH = 8
EMB = 32


def _cp():
    return pltpu.CompilerParams(
        dimension_semantics=("parallel",),
        vmem_limit_bytes=VMEM_LIMIT)


def _tap_offsets(S):
    return [dh * S + dw for dh in range(3) for dw in range(3)]


# ----------------------------------------------------------------------------
# Pallas kernels  (all activations spatial-in-lanes: (C, M) with M lane dense)
# ----------------------------------------------------------------------------


def _conv3x3_kernel(x_ref, w_ref, b_ref, o_ref, *, S, M, act):
    """Single 3x3 same-conv.  x_ref: (1, Cin_p, ROWS) bf16 row-flattened padded
    image; w_ref: (Cout, 9*Cin_p) bf16 (taps folded into K); b: (Cout, 1) f32;
    o_ref: (1, Cout, M) bf16, M = H*S (junk columns w>=W sliced off outside)."""
    x = x_ref[0]
    xk = jnp.concatenate([x[:, o:o + M] for o in _tap_offsets(S)], axis=0)
    acc = jnp.dot(w_ref[...], xk, preferred_element_type=jnp.float32) + b_ref[...]
    if act == "relu":
        acc = jnp.maximum(acc, 0.0)
    o_ref[0] = acc.astype(o_ref.dtype)


def _conv_pair_kernel(x_ref, w1_ref, b1_ref, w2_ref, b2_ref, mask_ref, o_ref,
                      *, S, M):
    """Two fused 3x3 convs (+ReLU each).  The intermediate activation stays in
    VMEM: its junk columns are zeroed with `mask` so that, flanked by S+1 zeros,
    it is exactly the zero-padded row-flattened input of the second conv."""
    offs = _tap_offsets(S)
    x = x_ref[0]
    xk = jnp.concatenate([x[:, o:o + M] for o in offs], axis=0)
    a1 = jnp.dot(w1_ref[...], xk, preferred_element_type=jnp.float32) + b1_ref[...]
    a1 = (jnp.maximum(a1, 0.0) * mask_ref[...]).astype(jnp.bfloat16)
    c1 = a1.shape[0]
    zpad = jnp.zeros((c1, S + 1), jnp.bfloat16)
    a1p = jnp.concatenate([zpad, a1, zpad], axis=1)          # (c1, M + 2S + 2)
    xk2 = jnp.concatenate([a1p[:, o:o + M] for o in offs], axis=0)
    a2 = jnp.dot(w2_ref[...], xk2, preferred_element_type=jnp.float32) + b2_ref[...]
    o_ref[0] = jnp.maximum(a2, 0.0).astype(o_ref.dtype)


def _conv_head_kernel(x_ref, w_ref, b_ref, hw_ref, hb_ref, o_ref, *, S, M):
    """Fused UNet decoder: 3x3 conv + ReLU + 1x1 conv (Cout=1) + threshold.
    sigmoid(logit) > 0.5  <=>  logit > 0, so the {0,1} mask is emitted directly
    as a lane-dense (1, M) row."""
    x = x_ref[0]
    xk = jnp.concatenate([x[:, o:o + M] for o in _tap_offsets(S)], axis=0)
    d = jnp.dot(w_ref[...], xk, preferred_element_type=jnp.float32) + b_ref[...]
    d = jnp.maximum(d, 0.0)                                   # (Cmid, M) f32
    logit = jnp.dot(hw_ref[...], d.astype(jnp.bfloat16),
                    preferred_element_type=jnp.float32) + hb_ref[...]   # (1, M)
    o_ref[0] = (logit > 0.0).astype(o_ref.dtype)


def _sam_head_kernel(x_ref, pew_ref, peb_ref, w1_ref, b1_ref, w2_ref, b2_ref,
                     mw_ref, mb_ref, o_ref):
    """Fused SAM stand-in, feature-major: patch-embed -> MLP (residual) -> mask
    head.  Tokens live in the lane dim; mask-head output is (nout, Ntok)."""
    tok = jnp.dot(pew_ref[...], x_ref[...],
                  preferred_element_type=jnp.float32) + peb_ref[...]
    tok_bf = tok.astype(jnp.bfloat16)
    h = jnp.maximum(jnp.dot(w1_ref[...], tok_bf,
                            preferred_element_type=jnp.float32) + b1_ref[...], 0.0)
    tok = tok + jnp.dot(w2_ref[...], h.astype(jnp.bfloat16),
                        preferred_element_type=jnp.float32) + b2_ref[...]
    m = jnp.dot(mw_ref[...], tok.astype(jnp.bfloat16),
                preferred_element_type=jnp.float32) + mb_ref[...]
    o_ref[...] = m


def _sigmoid_kernel(x_ref, o_ref):
    o_ref[...] = jax.nn.sigmoid(x_ref[...])


# ----------------------------------------------------------------------------
# Pallas wrappers
# ----------------------------------------------------------------------------


def _choose_s(H, W):
    """Padded row stride S >= W+2 such that H*S is a multiple of 128 (lane-dense
    stores); falls back to W+2 if that would cost too much padding."""
    for extra in range(0, 33):
        S = W + 2 + extra
        if (H * S) % 128 == 0:
            return S
    return W + 2


def _flatten_cm(x_bchw, cin_p, S):
    """(B, C, H, W) -> (B, Cin_p, (H+3)*S) bf16, zero-padded row-flattened
    (1 row top / 2 bottom, 1 col left / S-1-W right).  Channel-major, so this
    is just a pad + reshape (no transpose)."""
    B, C, H, W = x_bchw.shape
    if C < cin_p:
        x_bchw = jnp.pad(x_bchw, ((0, 0), (0, cin_p - C), (0, 0), (0, 0)))
    xp = jnp.pad(x_bchw, ((0, 0), (0, 0), (1, 2), (1, S - 1 - W)))
    return xp.reshape(B, cin_p, (H + 3) * S).astype(jnp.bfloat16)


def conv3x3(x_bchw, w, b, act="relu"):
    """3x3 same-conv (channel-major NCHW in, NCHW out, bf16)."""
    B, _, H, W = x_bchw.shape
    cout, k9 = w.shape
    cin_p = k9 // 9
    S = _choose_s(H, W)
    M = H * S
    xf = _flatten_cm(x_bchw, cin_p, S)
    rows = xf.shape[-1]
    out = pl.pallas_call(
        functools.partial(_conv3x3_kernel, S=S, M=M, act=act),
        out_shape=jax.ShapeDtypeStruct((B, cout, M), jnp.bfloat16),
        grid=(B,),
        in_specs=[
            pl.BlockSpec((1, cin_p, rows), lambda i: (i, 0, 0)),
            pl.BlockSpec(w.shape, lambda i: (0, 0)),
            pl.BlockSpec(b.shape, lambda i: (0, 0)),
        ],
        out_specs=pl.BlockSpec((1, cout, M), lambda i: (i, 0, 0)),
        compiler_params=_cp(),
    )(xf, w, b)
    return out.reshape(B, cout, H, S)[:, :, :, :W]


def conv3x3_pair(x_bchw, w1, b1, w2, b2):
    """Two fused 3x3 convs (+ReLU); intermediate activation never hits HBM."""
    B, _, H, W = x_bchw.shape
    cin_p = w1.shape[1] // 9
    c2 = w2.shape[0]
    S = _choose_s(H, W)
    M = H * S
    xf = _flatten_cm(x_bchw, cin_p, S)
    rows = xf.shape[-1]
    colmask = (jnp.arange(M) % S < W).astype(jnp.float32).reshape(1, M)
    out = pl.pallas_call(
        functools.partial(_conv_pair_kernel, S=S, M=M),
        out_shape=jax.ShapeDtypeStruct((B, c2, M), jnp.bfloat16),
        grid=(B,),
        in_specs=[
            pl.BlockSpec((1, cin_p, rows), lambda i: (i, 0, 0)),
            pl.BlockSpec(w1.shape, lambda i: (0, 0)),
            pl.BlockSpec(b1.shape, lambda i: (0, 0)),
            pl.BlockSpec(w2.shape, lambda i: (0, 0)),
            pl.BlockSpec(b2.shape, lambda i: (0, 0)),
            pl.BlockSpec(colmask.shape, lambda i: (0, 0)),
        ],
        out_specs=pl.BlockSpec((1, c2, M), lambda i: (i, 0, 0)),
        compiler_params=_cp(),
    )(xf, w1, b1, w2, b2, colmask)
    return out.reshape(B, c2, H, S)[:, :, :, :W]


def conv3x3_head(x_bchw, w, b, hw, hb):
    """Fused 3x3 conv + ReLU + 1x1(->1) + threshold.  Returns {0,1} (B,1,H,W)."""
    B, _, H, W = x_bchw.shape
    cin_p = w.shape[1] // 9
    S = _choose_s(H, W)
    M = H * S
    xf = _flatten_cm(x_bchw, cin_p, S)
    rows = xf.shape[-1]
    out = pl.pallas_call(
        functools.partial(_conv_head_kernel, S=S, M=M),
        out_shape=jax.ShapeDtypeStruct((B, 1, M), jnp.float32),
        grid=(B,),
        in_specs=[
            pl.BlockSpec((1, cin_p, rows), lambda i: (i, 0, 0)),
            pl.BlockSpec(w.shape, lambda i: (0, 0)),
            pl.BlockSpec(b.shape, lambda i: (0, 0)),
            pl.BlockSpec(hw.shape, lambda i: (0, 0)),
            pl.BlockSpec(hb.shape, lambda i: (0, 0)),
        ],
        out_specs=pl.BlockSpec((1, 1, M), lambda i: (i, 0, 0)),
        compiler_params=_cp(),
    )(xf, w, b, hw, hb)
    return out.reshape(B, 1, H, S)[:, :, :, :W]


def sam_head(x_km, p):
    """Fused patch-embed + MLP + mask-head.  x_km: (K, Ntok) -> (nout, Ntok)."""
    K, ntok = x_km.shape
    nout = p["mh_w"].shape[0]
    tn = 128 if ntok % 128 == 0 else ntok
    out = pl.pallas_call(
        _sam_head_kernel,
        out_shape=jax.ShapeDtypeStruct((nout, ntok), jnp.float32),
        grid=(ntok // tn,),
        in_specs=[
            pl.BlockSpec((K, tn), lambda i: (0, i)),
            pl.BlockSpec(p["pe_w"].shape, lambda i: (0, 0)),
            pl.BlockSpec(p["pe_b"].shape, lambda i: (0, 0)),
            pl.BlockSpec(p["mlp1_w"].shape, lambda i: (0, 0)),
            pl.BlockSpec(p["mlp1_b"].shape, lambda i: (0, 0)),
            pl.BlockSpec(p["mlp2_w"].shape, lambda i: (0, 0)),
            pl.BlockSpec(p["mlp2_b"].shape, lambda i: (0, 0)),
            pl.BlockSpec(p["mh_w"].shape, lambda i: (0, 0)),
            pl.BlockSpec(p["mh_b"].shape, lambda i: (0, 0)),
        ],
        out_specs=pl.BlockSpec((nout, tn), lambda i: (0, i)),
        compiler_params=_cp(),
    )(x_km.astype(jnp.bfloat16), p["pe_w"], p["pe_b"], p["mlp1_w"], p["mlp1_b"],
      p["mlp2_w"], p["mlp2_b"], p["mh_w"], p["mh_b"])
    return out


def pallas_sigmoid(x):
    """Lane-dense tiled sigmoid with >= 2 parallel grid steps."""
    shape = x.shape
    flat = x.astype(jnp.float32).reshape(-1)
    n = flat.shape[0]
    lanes = 512 if n >= 512 * 256 else 128
    rows = pl.cdiv(n, lanes)
    block_rows = min(256, pl.cdiv(rows, 8) * 8)
    rows_p = pl.cdiv(rows, block_rows) * block_rows
    if rows_p == block_rows:                 # keep both v7x TensorCores busy
        rows_p = 2 * block_rows
    flat = jnp.pad(flat, (0, rows_p * lanes - n))   # sigmoid(0)=0.5, sliced off
    arr = flat.reshape(rows_p, lanes)
    out = pl.pallas_call(
        _sigmoid_kernel,
        out_shape=jax.ShapeDtypeStruct((rows_p, lanes), jnp.float32),
        grid=(rows_p // block_rows,),
        in_specs=[pl.BlockSpec((block_rows, lanes), lambda i: (i, 0))],
        out_specs=pl.BlockSpec((block_rows, lanes), lambda i: (i, 0)),
        compiler_params=_cp(),
    )(arr)
    return out.reshape(-1)[:n].reshape(shape)


# ----------------------------------------------------------------------------
# Non-Pallas glue (fused by XLA under jit), channel-major
# ----------------------------------------------------------------------------


def maxpool2_cm(x):
    B, C, H, W = x.shape
    return x.reshape(B, C, H // 2, 2, W // 2, 2).max(axis=(3, 5))


def upsample2_cm(x):
    return jnp.repeat(jnp.repeat(x, 2, axis=2), 2, axis=3)


# ----------------------------------------------------------------------------
# Model pieces
# ----------------------------------------------------------------------------


def unet_forward(x_bchw, p):
    # TODO(synk): original UNet has chs=(3,64,128,256,512,1024) with checkpoint
    # weights; replaced by a scaled-down deterministic stand-in with the same
    # conv / pool / upsample / skip-concat data flow.
    e1 = conv3x3_pair(x_bchw, p["e1a_w"], p["e1a_b"], p["e1b_w"], p["e1b_b"])
    e2 = conv3x3(maxpool2_cm(e1), p["e2_w"], p["e2_b"], act="relu")
    d_in = jnp.concatenate([upsample2_cm(e2), e1], axis=1)        # (B, 24, H, W)
    # Fused: conv3x3 + ReLU + 1x1 head + (sigmoid > 0.5) == (logit > 0).
    prompt = conv3x3_head(d_in, p["d1_w"], p["d1_b"], p["uh_w"], p["uh_b"])
    return prompt                                                  # (B,1,H,W) {0,1}


def sam_model_forward(img_bchw, p):
    # TODO(synk): pretrained facebook/sam-vit-base vision encoder / prompt
    # encoder / mask decoder replaced by a tiny synthetic patch-embed + MLP +
    # mask-head producing low-res mask logits.
    B = img_bchw.shape[0]
    G = IMG // PATCH
    x_km = (img_bchw.reshape(B, 3, G, PATCH, G, PATCH)
            .transpose(1, 3, 5, 0, 2, 4)
            .reshape(3 * PATCH * PATCH, B * G * G))    # features-major tokens
    m = sam_head(x_km, p["sam"] if "sam" in p else p)  # (up*up, B*G*G)
    up = LOWRES // G
    m = (m.reshape(up, up, B, G, G)
         .transpose(2, 3, 0, 4, 1)
         .reshape(B, 1, LOWRES, LOWRES))
    return m  # low-res mask logits (stand-in for outputs.pred_masks)


def _forward_impl(pixel_values, params):
    """Mirrors SAM.forward: NCHW pixel_values -> (sigmoid mask (B,1,H,W), prompt)."""
    B, C, H, W = pixel_values.shape
    x = pixel_values.astype(jnp.float32)

    # 1) prompt = UNet(pixel_values); prompt = prompt > 0.5 (fused in the head).
    #    As in the reference forward, the prompt / seg labels never influence
    #    the returned prediction (masks is overwritten below); it is returned
    #    as an auxiliary output so the UNet kernels still run under jit.
    prompt = unet_forward(x, params["unet"])

    # 2) processor: resize + normalize image; resize segmentation labels.
    # TODO(synk): HF SamProcessor uses PIL resizing + model-config mean/std.
    originals = jax.image.resize(x, (B, C, IMG, IMG), method="bilinear")
    mean = jnp.array([0.485, 0.456, 0.406], jnp.float32).reshape(1, 3, 1, 1) * 255.0
    std = jnp.array([0.229, 0.224, 0.225], jnp.float32).reshape(1, 3, 1, 1) * 255.0
    originals = (originals - mean) / std
    seg_labels = jax.image.resize(prompt, (B, 1, LOWRES, LOWRES), method="nearest")
    del seg_labels  # as in the reference forward, `masks` is overwritten below

    # 3) outputs = sam(pixel_values=originals, multimask_output=False)
    pred_masks = sam_model_forward(originals, params["sam"])   # (B,1,LOWRES,LOWRES)

    # 4) post_process_masks: the two chained bilinear resizes (LOWRES -> model
    #    res -> original (H, W)) are collapsed into a single resize to (H, W).
    masks = jax.image.resize(pred_masks, (B, 1, H, W), method="bilinear")

    # 5) pred = sigmoid(masks), NCHW (B, 1, H, W)
    pred = pallas_sigmoid(masks)
    return pred, prompt


sam_forward_with_aux = jax.jit(_forward_impl)


def sam_forward(pixel_values, params):
    return sam_forward_with_aux(pixel_values, params)[0]


# ----------------------------------------------------------------------------
# Deterministic parameter init + one-time weight preparation
# ----------------------------------------------------------------------------


def init_params(key):
    ks = iter(jax.random.split(key, 16))

    def w(shape, scale=0.1):
        return scale * jax.random.normal(next(ks), shape, jnp.float32)

    unet = {
        "e1a_w": w((3, 3, 3, 8)), "e1a_b": jnp.zeros((8,), jnp.float32),
        "e1b_w": w((3, 3, 8, 8)), "e1b_b": jnp.zeros((8,), jnp.float32),
        "e2_w": w((3, 3, 8, 16)), "e2_b": jnp.zeros((16,), jnp.float32),
        "d1_w": w((3, 3, 24, 8)), "d1_b": jnp.zeros((8,), jnp.float32),
        "uh_w": w((8, 1)), "uh_b": jnp.zeros((1,), jnp.float32),
    }
    nout = (LOWRES // (IMG // PATCH)) ** 2
    sam = {
        "pe_w": w((PATCH * PATCH * 3, EMB)), "pe_b": jnp.zeros((EMB,), jnp.float32),
        "mlp1_w": w((EMB, 2 * EMB)), "mlp1_b": jnp.zeros((2 * EMB,), jnp.float32),
        "mlp2_w": w((2 * EMB, EMB)), "mlp2_b": jnp.zeros((EMB,), jnp.float32),
        "mh_w": w((EMB, nout)), "mh_b": jnp.zeros((nout,), jnp.float32),
    }
    return {"unet": unet, "sam": sam}


def prepare_params(raw):
    """One-time layout prep: K-folded bf16 conv weights (Cout, 9*Cin_pad),
    feature-major bf16 GEMM weights, lane-broadcastable (C, 1) f32 biases."""
    def conv_w(wt):
        kh, kw, cin, cout = wt.shape
        cin_p = ((cin + 7) // 8) * 8
        wt = jnp.pad(wt, ((0, 0), (0, 0), (0, cin_p - cin), (0, 0)))
        return (wt.reshape(kh * kw, cin_p, cout)
                .transpose(2, 0, 1)
                .reshape(cout, kh * kw * cin_p)
                .astype(jnp.bfloat16))

    def colb(b):
        return b.reshape(-1, 1).astype(jnp.float32)

    u, s = raw["unet"], raw["sam"]
    unet = {
        "e1a_w": conv_w(u["e1a_w"]), "e1a_b": colb(u["e1a_b"]),
        "e1b_w": conv_w(u["e1b_w"]), "e1b_b": colb(u["e1b_b"]),
        "e2_w": conv_w(u["e2_w"]), "e2_b": colb(u["e2_b"]),
        "d1_w": conv_w(u["d1_w"]), "d1_b": colb(u["d1_b"]),
        "uh_w": u["uh_w"].T.astype(jnp.bfloat16),            # (1, 8)
        "uh_b": u["uh_b"].reshape(1, 1).astype(jnp.float32),
    }
    sam = {
        "pe_w": s["pe_w"].T.astype(jnp.bfloat16), "pe_b": colb(s["pe_b"]),
        "mlp1_w": s["mlp1_w"].T.astype(jnp.bfloat16), "mlp1_b": colb(s["mlp1_b"]),
        "mlp2_w": s["mlp2_w"].T.astype(jnp.bfloat16), "mlp2_b": colb(s["mlp2_b"]),
        "mh_w": s["mh_w"].T.astype(jnp.bfloat16), "mh_b": colb(s["mh_b"]),
    }
    return {"unet": unet, "sam": sam}


# ----------------------------------------------------------------------------
# Main
# ----------------------------------------------------------------------------

if __name__ == "__main__":
    key = jax.random.PRNGKey(0)
    k_param, k_input = jax.random.split(key)

    params = prepare_params(init_params(k_param))
    # pixel_values: NCHW, like the PyTorch module (B=2, C=3, 16x16 spatial)
    pixel_values = jax.random.uniform(
        k_input, (2, 3, 16, 16), jnp.float32, minval=0.0, maxval=255.0
    )

    pred, prompt = sam_forward_with_aux(pixel_values, params)
    pred, prompt = jax.block_until_ready((pred, prompt))

    assert pred.shape == (2, 1, 16, 16), pred.shape
    assert bool(jnp.all(jnp.isfinite(pred)))
    assert bool(jnp.all((pred >= 0.0) & (pred <= 1.0)))
    assert prompt.shape == (2, 1, 16, 16), prompt.shape
    assert bool(jnp.all((prompt == 0.0) | (prompt == 1.0)))
    print("KERNEL_OK")
</pallas_src>

<mosaic_0001>
module attributes {stable_mosaic.version = 11 : i64} {
  func.func @_sam_head_kernel(%arg0: i32, %arg1: memref<192x128xbf16, #tpu.memory_space<vmem>>, %arg2: memref<32x192xbf16, #tpu.memory_space<vmem>>, %arg3: memref<32x1xf32, #tpu.memory_space<vmem>>, %arg4: memref<64x32xbf16, #tpu.memory_space<vmem>>, %arg5: memref<64x1xf32, #tpu.memory_space<vmem>>, %arg6: memref<32x64xbf16, #tpu.memory_space<vmem>>, %arg7: memref<32x1xf32, #tpu.memory_space<vmem>>, %arg8: memref<4x32xbf16, #tpu.memory_space<vmem>>, %arg9: memref<4x1xf32, #tpu.memory_space<vmem>>, %arg10: memref<4x128xf32, #tpu.memory_space<vmem>>) attributes {dimension_semantics = [#tpu.dimension_semantics<parallel>], iteration_bounds = array<i64: 1>, scalar_prefetch = 0 : i64, scratch_operands = 0 : i64, tpu.core_type = #tpu.core_type<tc>, window_params = [{transform_indices = @transform_0, window_bounds = array<i64: 192, 128>}, {pipeline_mode = #tpu.pipeline_mode<synchronous>, transform_indices = @transform_1, window_bounds = array<i64: 32, 192>}, {pipeline_mode = #tpu.pipeline_mode<synchronous>, transform_indices = @transform_2, window_bounds = array<i64: 32, 1>}, {pipeline_mode = #tpu.pipeline_mode<synchronous>, transform_indices = @transform_3, window_bounds = array<i64: 64, 32>}, {pipeline_mode = #tpu.pipeline_mode<synchronous>, transform_indices = @transform_4, window_bounds = array<i64: 64, 1>}, {pipeline_mode = #tpu.pipeline_mode<synchronous>, transform_indices = @transform_5, window_bounds = array<i64: 32, 64>}, {pipeline_mode = #tpu.pipeline_mode<synchronous>, transform_indices = @transform_6, window_bounds = array<i64: 32, 1>}, {pipeline_mode = #tpu.pipeline_mode<synchronous>, transform_indices = @transform_7, window_bounds = array<i64: 4, 32>}, {pipeline_mode = #tpu.pipeline_mode<synchronous>, transform_indices = @transform_8, window_bounds = array<i64: 4, 1>}, {transform_indices = @transform_9, window_bounds = array<i64: 4, 128>}]} {
    %c0 = arith.constant 0 : index
    %c0_0 = arith.constant 0 : index
    %0 = vector.load %arg2[%c0, %c0_0] : memref<32x192xbf16, #tpu.memory_space<vmem>>, vector<32x192xbf16>
    %c0_1 = arith.constant 0 : index
    %c0_2 = arith.constant 0 : index
    %1 = vector.load %arg1[%c0_1, %c0_2] : memref<192x128xbf16, #tpu.memory_space<vmem>>, vector<192x128xbf16>
    %cst = arith.constant dense<0.000000e+00> : vector<32x128xf32>
    %2 = tpu.matmul %0, %1, %cst {dimension_numbers = #tpu.dot_dimension_numbers<[1], [0], [0], [1], [0, 0, 1, 1], [], []>} : vector<32x192xbf16>, vector<192x128xbf16>, vector<32x128xf32> -> vector<32x128xf32>
    %c0_3 = arith.constant 0 : index
    %c0_4 = arith.constant 0 : index
    %3 = vector.load %arg3[%c0_3, %c0_4] : memref<32x1xf32, #tpu.memory_space<vmem>>, vector<32x1xf32>
    %4 = vector.broadcast %3 : vector<32x1xf32> to vector<32x128xf32>
    %5 = arith.addf %2, %4 : vector<32x128xf32>
    %6 = arith.truncf %5 : vector<32x128xf32> to vector<32x128xbf16>
    %c0_5 = arith.constant 0 : index
    %c0_6 = arith.constant 0 : index
    %7 = vector.load %arg4[%c0_5, %c0_6] : memref<64x32xbf16, #tpu.memory_space<vmem>>, vector<64x32xbf16>
    %cst_7 = arith.constant dense<0.000000e+00> : vector<64x128xf32>
    %8 = tpu.matmul %7, %6, %cst_7 {dimension_numbers = #tpu.dot_dimension_numbers<[1], [0], [0], [1], [0, 0, 1, 1], [], []>} : vector<64x32xbf16>, vector<32x128xbf16>, vector<64x128xf32> -> vector<64x128xf32>
    %c0_8 = arith.constant 0 : index
    %c0_9 = arith.constant 0 : index
    %9 = vector.load %arg5[%c0_8, %c0_9] : memref<64x1xf32, #tpu.memory_space<vmem>>, vector<64x1xf32>
    %10 = vector.broadcast %9 : vector<64x1xf32> to vector<64x128xf32>
    %11 = arith.addf %8, %10 : vector<64x128xf32>
    %cst_10 = arith.constant 0.000000e+00 : f32
    %12 = vector.broadcast %cst_10 : f32 to vector<64x128xf32>
    %13 = arith.maximumf %11, %12 : vector<64x128xf32>
    %c0_11 = arith.constant 0 : index
    %c0_12 = arith.constant 0 : index
    %14 = vector.load %arg6[%c0_11, %c0_12] : memref<32x64xbf16, #tpu.memory_space<vmem>>, vector<32x64xbf16>
    %15 = arith.truncf %13 : vector<64x128xf32> to vector<64x128xbf16>
    %cst_13 = arith.constant dense<0.000000e+00> : vector<32x128xf32>
    %16 = tpu.matmul %14, %15, %cst_13 {dimension_numbers = #tpu.dot_dimension_numbers<[1], [0], [0], [1], [0, 0, 1, 1], [], []>} : vector<32x64xbf16>, vector<64x128xbf16>, vector<32x128xf32> -> vector<32x128xf32>
    %17 = arith.addf %5, %16 : vector<32x128xf32>
    %c0_14 = arith.constant 0 : index
    %c0_15 = arith.constant 0 : index
    %18 = vector.load %arg7[%c0_14, %c0_15] : memref<32x1xf32, #tpu.memory_space<vmem>>, vector<32x1xf32>
    %19 = vector.broadcast %18 : vector<32x1xf32> to vector<32x128xf32>
    %20 = arith.addf %17, %19 : vector<32x128xf32>
    %c0_16 = arith.constant 0 : index
    %c0_17 = arith.constant 0 : index
    %21 = vector.load %arg8[%c0_16, %c0_17] : memref<4x32xbf16, #tpu.memory_space<vmem>>, vector<4x32xbf16>
    %22 = arith.truncf %20 : vector<32x128xf32> to vector<32x128xbf16>
    %cst_18 = arith.constant dense<0.000000e+00> : vector<4x128xf32>
    %23 = tpu.matmul %21, %22, %cst_18 {dimension_numbers = #tpu.dot_dimension_numbers<[1], [0], [0], [1], [0, 0, 1, 1], [], []>} : vector<4x32xbf16>, vector<32x128xbf16>, vector<4x128xf32> -> vector<4x128xf32>
    %c0_19 = arith.constant 0 : index
    %c0_20 = arith.constant 0 : index
    %24 = vector.load %arg9[%c0_19, %c0_20] : memref<4x1xf32, #tpu.memory_space<vmem>>, vector<4x1xf32>
    %25 = vector.broadcast %24 : vector<4x1xf32> to vector<4x128xf32>
    %26 = arith.addf %23, %25 : vector<4x128xf32>
    %c0_21 = arith.constant 0 : index
    %c0_22 = arith.constant 0 : index
    %27 = vector.load %arg10[%c0_21, %c0_22] : memref<4x128xf32, #tpu.memory_space<vmem>>, vector<4x128xf32>
    tpu.vector_store %arg10[%c0_21, %c0_22], %26 {strides = array<i32>} : memref<4x128xf32, #tpu.memory_space<vmem>>, vector<4x128xf32>,
    return
  }
  func.func @transform_0(%arg0: i32) -> (i32, i32) {
    %c0_i32 = arith.constant 0 : i32
    %c0_i32_0 = arith.constant 0 : i32
    return %c0_i32, %arg0 : i32, i32
  }
  func.func @transform_1(%arg0: i32) -> (i32, i32) {
    %c0_i32 = arith.constant 0 : i32
    %c0_i32_0 = arith.constant 0 : i32
    %c0_i32_1 = arith.constant 0 : i32
    return %c0_i32, %c0_i32_0 : i32, i32
  }
  func.func @transform_2(%arg0: i32) -> (i32, i32) {
    %c0_i32 = arith.constant 0 : i32
    %c0_i32_0 = arith.constant 0 : i32
    %c0_i32_1 = arith.constant 0 : i32
    return %c0_i32, %c0_i32_0 : i32, i32
  }
  func.func @transform_3(%arg0: i32) -> (i32, i32) {
    %c0_i32 = arith.constant 0 : i32
    %c0_i32_0 = arith.constant 0 : i32
    %c0_i32_1 = arith.constant 0 : i32
    return %c0_i32, %c0_i32_0 : i32, i32
  }
  func.func @transform_4(%arg0: i32) -> (i32, i32) {
    %c0_i32 = arith.constant 0 : i32
    %c0_i32_0 = arith.constant 0 : i32
    %c0_i32_1 = arith.constant 0 : i32
    return %c0_i32, %c0_i32_0 : i32, i32
  }
  func.func @transform_5(%arg0: i32) -> (i32, i32) {
    %c0_i32 = arith.constant 0 : i32
    %c0_i32_0 = arith.constant 0 : i32
    %c0_i32_1 = arith.constant 0 : i32
    return %c0_i32, %c0_i32_0 : i32, i32
  }
  func.func @transform_6(%arg0: i32) -> (i32, i32) {
    %c0_i32 = arith.constant 0 : i32
    %c0_i32_0 = arith.constant 0 : i32
    %c0_i32_1 = arith.constant 0 : i32
    return %c0_i32, %c0_i32_0 : i32, i32
  }
  func.func @transform_7(%arg0: i32) -> (i32, i32) {
    %c0_i32 = arith.constant 0 : i32
    %c0_i32_0 = arith.constant 0 : i32
    %c0_i32_1 = arith.constant 0 : i32
    return %c0_i32, %c0_i32_0 : i32, i32
  }
  func.func @transform_8(%arg0: i32) -> (i32, i32) {
    %c0_i32 = arith.constant 0 : i32
    %c0_i32_0 = arith.constant 0 : i32
    %c0_i32_1 = arith.constant 0 : i32
    return %c0_i32, %c0_i32_0 : i32, i32
  }
  func.func @transform_9(%arg0: i32) -> (i32, i32) {
    %c0_i32 = arith.constant 0 : i32
    %c0_i32_0 = arith.constant 0 : i32
    return %c0_i32, %arg0 : i32, i32
  }
}

module attributes {stable_mosaic.version = 11 : i64} {
  func.func @_sigmoid_kernel(%arg0: i32, %arg1: memref<8x128xf32, #tpu.memory_space<vmem>>, %arg2: memref<8x128xf32, #tpu.memory_space<vmem>>) attributes {dimension_semantics = [#tpu.dimension_semantics<parallel>], iteration_bounds = array<i64: 2>, scalar_prefetch = 0 : i64, scratch_operands = 0 : i64, tpu.core_type = #tpu.core_type<tc>, window_params = [{transform_indices = @transform_0, window_bounds = array<i64: 8, 128>}, {transform_indices = @transform_1, window_bounds = array<i64: 8, 128>}]} {
    %c0 = arith.constant 0 : index
    %c0_0 = arith.constant 0 : index
    %0 = vector.load %arg1[%c0, %c0_0] : memref<8x128xf32, #tpu.memory_space<vmem>>, vector<8x128xf32>
    %1 = arith.negf %0 : vector<8x128xf32>
    %2 = math.exp %1 : vector<8x128xf32>
    %cst = arith.constant 1.000000e+00 : f32
    %3 = vector.broadcast %cst : f32 to vector<8x128xf32>
    %4 = arith.addf %3, %2 : vector<8x128xf32>
    %5 = arith.divf %3, %4 : vector<8x128xf32>
    %c0_1 = arith.constant 0 : index
    %c0_2 = arith.constant 0 : index
    %6 = vector.load %arg2[%c0_1, %c0_2] : memref<8x128xf32, #tpu.memory_space<vmem>>, vector<8x128xf32>
    tpu.vector_store %arg2[%c0_1, %c0_2], %5 {strides = array<i32>} : memref<8x128xf32, #tpu.memory_space<vmem>>, vector<8x128xf32>,
    return
  }
  func.func @transform_0(%arg0: i32) -> (i32, i32) {
    %c0_i32 = arith.constant 0 : i32
    %c0_i32_0 = arith.constant 0 : i32
    return %arg0, %c0_i32 : i32, i32
  }
  func.func @transform_1(%arg0: i32) -> (i32, i32) {
    %c0_i32 = arith.constant 0 : i32
    %c0_i32_0 = arith.constant 0 : i32
    return %arg0, %c0_i32 : i32, i32
  }
}

module attributes {stable_mosaic.version = 11 : i64} {
  func.func @_conv_pair_kernel(%arg0: i32, %arg1: memref<1x8x456xbf16, #tpu.memory_space<vmem>>, %arg2: memref<8x72xbf16, #tpu.memory_space<vmem>>, %arg3: memref<8x1xf32, #tpu.memory_space<vmem>>, %arg4: memref<8x72xbf16, #tpu.memory_space<vmem>>, %arg5: memref<8x1xf32, #tpu.memory_space<vmem>>, %arg6: memref<1x384xf32, #tpu.memory_space<vmem>>, %arg7: memref<1x8x384xbf16, #tpu.memory_space<vmem>>) attributes {dimension_semantics = [#tpu.dimension_semantics<parallel>], iteration_bounds = array<i64: 2>, scalar_prefetch = 0 : i64, scratch_operands = 0 : i64, tpu.core_type = #tpu.core_type<tc>, window_params = [{transform_indices = @transform_0, window_bounds = array<i64: 1, 8, 456>}, {pipeline_mode = #tpu.pipeline_mode<synchronous>, transform_indices = @transform_1, window_bounds = array<i64: 8, 72>}, {pipeline_mode = #tpu.pipeline_mode<synchronous>, transform_indices = @transform_2, window_bounds = array<i64: 8, 1>}, {pipeline_mode = #tpu.pipeline_mode<synchronous>, transform_indices = @transform_3, window_bounds = array<i64: 8, 72>}, {pipeline_mode = #tpu.pipeline_mode<synchronous>, transform_indices = @transform_4, window_bounds = array<i64: 8, 1>}, {pipeline_mode = #tpu.pipeline_mode<synchronous>, transform_indices = @transform_5, window_bounds = array<i64: 1, 384>}, {transform_indices = @transform_6, window_bounds = array<i64: 1, 8, 384>}]} {
    %c0 = arith.constant 0 : index
    %c0_0 = arith.constant 0 : index
    %c0_1 = arith.constant 0 : index
    %0 = vector.load %arg1[%c0, %c0_0, %c0_1] : memref<1x8x456xbf16, #tpu.memory_space<vmem>>, vector<1x8x456xbf16>
    %1 = vector.shape_cast %0 : vector<1x8x456xbf16> to vector<8x456xbf16>
    %2 = vector.extract_strided_slice %1 {offsets = [0, 0], sizes = [8, 384], strides = [1, 1]} : vector<8x456xbf16> to vector<8x384xbf16>
    %3 = vector.extract_strided_slice %1 {offsets = [0, 1], sizes = [8, 384], strides = [1, 1]} : vector<8x456xbf16> to vector<8x384xbf16>
    %4 = vector.extract_strided_slice %1 {offsets = [0, 2], sizes = [8, 384], strides = [1, 1]} : vector<8x456xbf16> to vector<8x384xbf16>
    %5 = vector.extract_strided_slice %1 {offsets = [0, 24], sizes = [8, 384], strides = [1, 1]} : vector<8x456xbf16> to vector<8x384xbf16>
    %6 = vector.extract_strided_slice %1 {offsets = [0, 25], sizes = [8, 384], strides = [1, 1]} : vector<8x456xbf16> to vector<8x384xbf16>
    %7 = vector.extract_strided_slice %1 {offsets = [0, 26], sizes = [8, 384], strides = [1, 1]} : vector<8x456xbf16> to vector<8x384xbf16>
    %8 = vector.extract_strided_slice %1 {offsets = [0, 48], sizes = [8, 384], strides = [1, 1]} : vector<8x456xbf16> to vector<8x384xbf16>
    %9 = vector.extract_strided_slice %1 {offsets = [0, 49], sizes = [8, 384], strides = [1, 1]} : vector<8x456xbf16> to vector<8x384xbf16>
    %10 = vector.extract_strided_slice %1 {offsets = [0, 50], sizes = [8, 384], strides = [1, 1]} : vector<8x456xbf16> to vector<8x384xbf16>
    %11 = tpu.concatenate %2, %3, %4, %5, %6, %7, %8, %9, %10 in 0 : vector<8x384xbf16>, vector<8x384xbf16>, vector<8x384xbf16>, vector<8x384xbf16>, vector<8x384xbf16>, vector<8x384xbf16>, vector<8x384xbf16>, vector<8x384xbf16>, vector<8x384xbf16> -> vector<72x384xbf16>
    %c0_2 = arith.constant 0 : index
    %c0_3 = arith.constant 0 : index
    %12 = vector.load %arg2[%c0_2, %c0_3] : memref<8x72xbf16, #tpu.memory_space<vmem>>, vector<8x72xbf16>
    %cst = arith.constant dense<0.000000e+00> : vector<8x384xf32>
    %13 = tpu.matmul %12, %11, %cst {dimension_numbers = #tpu.dot_dimension_numbers<[1], [0], [0], [1], [0, 0, 1, 1], [], []>} : vector<8x72xbf16>, vector<72x384xbf16>, vector<8x384xf32> -> vector<8x384xf32>
    %c0_4 = arith.constant 0 : index
    %c0_5 = arith.constant 0 : index
    %14 = vector.load %arg3[%c0_4, %c0_5] : memref<8x1xf32, #tpu.memory_space<vmem>>, vector<8x1xf32>
    %15 = vector.broadcast %14 : vector<8x1xf32> to vector<8x384xf32>
    %16 = arith.addf %13, %15 : vector<8x384xf32>
    %cst_6 = arith.constant 0.000000e+00 : f32
    %17 = vector.broadcast %cst_6 : f32 to vector<8x384xf32>
    %18 = arith.maximumf %16, %17 : vector<8x384xf32>
    %c0_7 = arith.constant 0 : index
    %c0_8 = arith.constant 0 : index
    %19 = vector.load %arg6[%c0_7, %c0_8] : memref<1x384xf32, #tpu.memory_space<vmem>>, vector<1x384xf32>
    %20 = vector.broadcast %19 : vector<1x384xf32> to vector<8x384xf32>
    %21 = arith.mulf %18, %20 : vector<8x384xf32>
    %22 = arith.truncf %21 : vector<8x384xf32> to vector<8x384xbf16>
    %cst_9 = arith.constant 0.000000e+00 : bf16
    %23 = vector.broadcast %cst_9 : bf16 to vector<8x25xbf16>
    %24 = tpu.concatenate %23, %22, %23 in 1 : vector<8x25xbf16>, vector<8x384xbf16>, vector<8x25xbf16> -> vector<8x434xbf16>
    %25 = vector.extract_strided_slice %24 {offsets = [0, 0], sizes = [8, 384], strides = [1, 1]} : vector<8x434xbf16> to vector<8x384xbf16>
    %26 = vector.extract_strided_slice %24 {offsets = [0, 1], sizes = [8, 384], strides = [1, 1]} : vector<8x434xbf16> to vector<8x384xbf16>
    %27 = vector.extract_strided_slice %24 {offsets = [0, 2], sizes = [8, 384], strides = [1, 1]} : vector<8x434xbf16> to vector<8x384xbf16>
    %28 = vector.extract_strided_slice %24 {offsets = [0, 24], sizes = [8, 384], strides = [1, 1]} : vector<8x434xbf16> to vector<8x384xbf16>
    %29 = vector.extract_strided_slice %24 {offsets = [0, 25], sizes = [8, 384], strides = [1, 1]} : vector<8x434xbf16> to vector<8x384xbf16>
    %30 = vector.extract_strided_slice %24 {offsets = [0, 26], sizes = [8, 384], strides = [1, 1]} : vector<8x434xbf16> to vector<8x384xbf16>
    %31 = vector.extract_strided_slice %24 {offsets = [0, 48], sizes = [8, 384], strides = [1, 1]} : vector<8x434xbf16> to vector<8x384xbf16>
    %32 = vector.extract_strided_slice %24 {offsets = [0, 49], sizes = [8, 384], strides = [1, 1]} : vector<8x434xbf16> to vector<8x384xbf16>
    %33 = vector.extract_strided_slice %24 {offsets = [0, 50], sizes = [8, 384], strides = [1, 1]} : vector<8x434xbf16> to vector<8x384xbf16>
    %34 = tpu.concatenate %25, %26, %27, %28, %29, %30, %31, %32, %33 in 0 : vector<8x384xbf16>, vector<8x384xbf16>, vector<8x384xbf16>, vector<8x384xbf16>, vector<8x384xbf16>, vector<8x384xbf16>, vector<8x384xbf16>, vector<8x384xbf16>, vector<8x384xbf16> -> vector<72x384xbf16>
    %c0_10 = arith.constant 0 : index
    %c0_11 = arith.constant 0 : index
    %35 = vector.load %arg4[%c0_10, %c0_11] : memref<8x72xbf16, #tpu.memory_space<vmem>>, vector<8x72xbf16>
    %cst_12 = arith.constant dense<0.000000e+00> : vector<8x384xf32>
    %36 = tpu.matmul %35, %34, %cst_12 {dimension_numbers = #tpu.dot_dimension_numbers<[1], [0], [0], [1], [0, 0, 1, 1], [], []>} : vector<8x72xbf16>, vector<72x384xbf16>, vector<8x384xf32> -> vector<8x384xf32>
    %c0_13 = arith.constant 0 : index
    %c0_14 = arith.constant 0 : index
    %37 = vector.load %arg5[%c0_13, %c0_14] : memref<8x1xf32, #tpu.memory_space<vmem>>, vector<8x1xf32>
    %38 = vector.broadcast %37 : vector<8x1xf32> to vector<8x384xf32>
    %39 = arith.addf %36, %38 : vector<8x384xf32>
    %cst_15 = arith.constant 0.000000e+00 : f32
    %40 = vector.broadcast %cst_15 : f32 to vector<8x384xf32>
    %41 = arith.maximumf %39, %40 : vector<8x384xf32>
    %42 = arith.truncf %41 : vector<8x384xf32> to vector<8x384xbf16>
    %c0_16 = arith.constant 0 : index
    %c0_17 = arith.constant 0 : index
    %c0_18 = arith.constant 0 : index
    %43 = vector.load %arg7[%c0_16, %c0_17, %c0_18] : memref<1x8x384xbf16, #tpu.memory_space<vmem>>, vector<1x8x384xbf16>
    %44 = vector.shape_cast %43 : vector<1x8x384xbf16> to vector<8x384xbf16>
    %45 = vector.shape_cast %42 : vector<8x384xbf16> to vector<1x8x384xbf16>
    tpu.vector_store %arg7[%c0_16, %c0_17, %c0_18], %45 {strides = array<i32>} : memref<1x8x384xbf16, #tpu.memory_space<vmem>>, vector<1x8x384xbf16>,
    return
  }
  func.func @transform_0(%arg0: i32) -> (i32, i32, i32) {
    %c0_i32 = arith.constant 0 : i32
    %c0_i32_0 = arith.constant 0 : i32
    %c0_i32_1 = arith.constant 0 : i32
    return %arg0, %c0_i32, %c0_i32_0 : i32, i32, i32
  }
  func.func @transform_1(%arg0: i32) -> (i32, i32) {
    %c0_i32 = arith.constant 0 : i32
    %c0_i32_0 = arith.constant 0 : i32
    %c0_i32_1 = arith.constant 0 : i32
    return %c0_i32, %c0_i32_0 : i32, i32
  }
  func.func @transform_2(%arg0: i32) -> (i32, i32) {
    %c0_i32 = arith.constant 0 : i32
    %c0_i32_0 = arith.constant 0 : i32
    %c0_i32_1 = arith.constant 0 : i32
    return %c0_i32, %c0_i32_0 : i32, i32
  }
  func.func @transform_3(%arg0: i32) -> (i32, i32) {
    %c0_i32 = arith.constant 0 : i32
    %c0_i32_0 = arith.constant 0 : i32
    %c0_i32_1 = arith.constant 0 : i32
    return %c0_i32, %c0_i32_0 : i32, i32
  }
  func.func @transform_4(%arg0: i32) -> (i32, i32) {
    %c0_i32 = arith.constant 0 : i32
    %c0_i32_0 = arith.constant 0 : i32
    %c0_i32_1 = arith.constant 0 : i32
    return %c0_i32, %c0_i32_0 : i32, i32
  }
  func.func @transform_5(%arg0: i32) -> (i32, i32) {
    %c0_i32 = arith.constant 0 : i32
    %c0_i32_0 = arith.constant 0 : i32
    %c0_i32_1 = arith.constant 0 : i32
    return %c0_i32, %c0_i32_0 : i32, i32
  }
  func.func @transform_6(%arg0: i32) -> (i32, i32, i32) {
    %c0_i32 = arith.constant 0 : i32
    %c0_i32_0 = arith.constant 0 : i32
    %c0_i32_1 = arith.constant 0 : i32
    return %arg0, %c0_i32, %c0_i32_0 : i32, i32, i32
  }
}

module attributes {stable_mosaic.version = 11 : i64} {
  func.func @_conv3x3_kernel(%arg0: i32, %arg1: memref<1x8x176xbf16, #tpu.memory_space<vmem>>, %arg2: memref<16x72xbf16, #tpu.memory_space<vmem>>, %arg3: memref<16x1xf32, #tpu.memory_space<vmem>>, %arg4: memref<1x16x128xbf16, #tpu.memory_space<vmem>>) attributes {dimension_semantics = [#tpu.dimension_semantics<parallel>], iteration_bounds = array<i64: 2>, scalar_prefetch = 0 : i64, scratch_operands = 0 : i64, tpu.core_type = #tpu.core_type<tc>, window_params = [{transform_indices = @transform_0, window_bounds = array<i64: 1, 8, 176>}, {pipeline_mode = #tpu.pipeline_mode<synchronous>, transform_indices = @transform_1, window_bounds = array<i64: 16, 72>}, {pipeline_mode = #tpu.pipeline_mode<synchronous>, transform_indices = @transform_2, window_bounds = array<i64: 16, 1>}, {transform_indices = @transform_3, window_bounds = array<i64: 1, 16, 128>}]} {
    %c0 = arith.constant 0 : index
    %c0_0 = arith.constant 0 : index
    %c0_1 = arith.constant 0 : index
    %0 = vector.load %arg1[%c0, %c0_0, %c0_1] : memref<1x8x176xbf16, #tpu.memory_space<vmem>>, vector<1x8x176xbf16>
    %1 = vector.shape_cast %0 : vector<1x8x176xbf16> to vector<8x176xbf16>
    %2 = vector.extract_strided_slice %1 {offsets = [0, 0], sizes = [8, 128], strides = [1, 1]} : vector<8x176xbf16> to vector<8x128xbf16>
    %3 = vector.extract_strided_slice %1 {offsets = [0, 1], sizes = [8, 128], strides = [1, 1]} : vector<8x176xbf16> to vector<8x128xbf16>
    %4 = vector.extract_strided_slice %1 {offsets = [0, 2], sizes = [8, 128], strides = [1, 1]} : vector<8x176xbf16> to vector<8x128xbf16>
    %5 = vector.extract_strided_slice %1 {offsets = [0, 16], sizes = [8, 128], strides = [1, 1]} : vector<8x176xbf16> to vector<8x128xbf16>
    %6 = vector.extract_strided_slice %1 {offsets = [0, 17], sizes = [8, 128], strides = [1, 1]} : vector<8x176xbf16> to vector<8x128xbf16>
    %7 = vector.extract_strided_slice %1 {offsets = [0, 18], sizes = [8, 128], strides = [1, 1]} : vector<8x176xbf16> to vector<8x128xbf16>
    %8 = vector.extract_strided_slice %1 {offsets = [0, 32], sizes = [8, 128], strides = [1, 1]} : vector<8x176xbf16> to vector<8x128xbf16>
    %9 = vector.extract_strided_slice %1 {offsets = [0, 33], sizes = [8, 128], strides = [1, 1]} : vector<8x176xbf16> to vector<8x128xbf16>
    %10 = vector.extract_strided_slice %1 {offsets = [0, 34], sizes = [8, 128], strides = [1, 1]} : vector<8x176xbf16> to vector<8x128xbf16>
    %11 = tpu.concatenate %2, %3, %4, %5, %6, %7, %8, %9, %10 in 0 : vector<8x128xbf16>, vector<8x128xbf16>, vector<8x128xbf16>, vector<8x128xbf16>, vector<8x128xbf16>, vector<8x128xbf16>, vector<8x128xbf16>, vector<8x128xbf16>, vector<8x128xbf16> -> vector<72x128xbf16>
    %c0_2 = arith.constant 0 : index
    %c0_3 = arith.constant 0 : index
    %12 = vector.load %arg2[%c0_2, %c0_3] : memref<16x72xbf16, #tpu.memory_space<vmem>>, vector<16x72xbf16>
    %cst = arith.constant dense<0.000000e+00> : vector<16x128xf32>
    %13 = tpu.matmul %12, %11, %cst {dimension_numbers = #tpu.dot_dimension_numbers<[1], [0], [0], [1], [0, 0, 1, 1], [], []>} : vector<16x72xbf16>, vector<72x128xbf16>, vector<16x128xf32> -> vector<16x128xf32>
    %c0_4 = arith.constant 0 : index
    %c0_5 = arith.constant 0 : index
    %14 = vector.load %arg3[%c0_4, %c0_5] : memref<16x1xf32, #tpu.memory_space<vmem>>, vector<16x1xf32>
    %15 = vector.broadcast %14 : vector<16x1xf32> to vector<16x128xf32>
    %16 = arith.addf %13, %15 : vector<16x128xf32>
    %cst_6 = arith.constant 0.000000e+00 : f32
    %17 = vector.broadcast %cst_6 : f32 to vector<16x128xf32>
    %18 = arith.maximumf %16, %17 : vector<16x128xf32>
    %19 = arith.truncf %18 : vector<16x128xf32> to vector<16x128xbf16>
    %c0_7 = arith.constant 0 : index
    %c0_8 = arith.constant 0 : index
    %c0_9 = arith.constant 0 : index
    %20 = vector.load %arg4[%c0_7, %c0_8, %c0_9] : memref<1x16x128xbf16, #tpu.memory_space<vmem>>, vector<1x16x128xbf16>
    %21 = vector.shape_cast %20 : vector<1x16x128xbf16> to vector<16x128xbf16>
    %22 = vector.shape_cast %19 : vector<16x128xbf16> to vector<1x16x128xbf16>
    tpu.vector_store %arg4[%c0_7, %c0_8, %c0_9], %22 {strides = array<i32>} : memref<1x16x128xbf16, #tpu.memory_space<vmem>>, vector<1x16x128xbf16>,
    return
  }
  func.func @transform_0(%arg0: i32) -> (i32, i32, i32) {
    %c0_i32 = arith.constant 0 : i32
    %c0_i32_0 = arith.constant 0 : i32
    %c0_i32_1 = arith.constant 0 : i32
    return %arg0, %c0_i32, %c0_i32_0 : i32, i32, i32
  }
  func.func @transform_1(%arg0: i32) -> (i32, i32) {
    %c0_i32 = arith.constant 0 : i32
    %c0_i32_0 = arith.constant 0 : i32
    %c0_i32_1 = arith.constant 0 : i32
    return %c0_i32, %c0_i32_0 : i32, i32
  }
  func.func @transform_2(%arg0: i32) -> (i32, i32) {
    %c0_i32 = arith.constant 0 : i32
    %c0_i32_0 = arith.constant 0 : i32
    %c0_i32_1 = arith.constant 0 : i32
    return %c0_i32, %c0_i32_0 : i32, i32
  }
  func.func @transform_3(%arg0: i32) -> (i32, i32, i32) {
    %c0_i32 = arith.constant 0 : i32
    %c0_i32_0 = arith.constant 0 : i32
    %c0_i32_1 = arith.constant 0 : i32
    return %arg0, %c0_i32, %c0_i32_0 : i32, i32, i32
  }
}

module attributes {stable_mosaic.version = 11 : i64} {
  func.func @_conv_head_kernel(%arg0: i32, %arg1: memref<1x24x456xbf16, #tpu.memory_space<vmem>>, %arg2: memref<8x216xbf16, #tpu.memory_space<vmem>>, %arg3: memref<8x1xf32, #tpu.memory_space<vmem>>, %arg4: memref<1x8xbf16, #tpu.memory_space<vmem>>, %arg5: memref<1x1xf32, #tpu.memory_space<vmem>>, %arg6: memref<1x1x384xf32, #tpu.memory_space<vmem>>) attributes {dimension_semantics = [#tpu.dimension_semantics<parallel>], iteration_bounds = array<i64: 2>, scalar_prefetch = 0 : i64, scratch_operands = 0 : i64, tpu.core_type = #tpu.core_type<tc>, window_params = [{transform_indices = @transform_0, window_bounds = array<i64: 1, 24, 456>}, {pipeline_mode = #tpu.pipeline_mode<synchronous>, transform_indices = @transform_1, window_bounds = array<i64: 8, 216>}, {pipeline_mode = #tpu.pipeline_mode<synchronous>, transform_indices = @transform_2, window_bounds = array<i64: 8, 1>}, {pipeline_mode = #tpu.pipeline_mode<synchronous>, transform_indices = @transform_3, window_bounds = array<i64: 1, 8>}, {pipeline_mode = #tpu.pipeline_mode<synchronous>, transform_indices = @transform_4, window_bounds = array<i64: 1, 1>}, {transform_indices = @transform_5, window_bounds = array<i64: 1, 1, 384>}]} {
    %c0 = arith.constant 0 : index
    %c0_0 = arith.constant 0 : index
    %c0_1 = arith.constant 0 : index
    %0 = vector.load %arg1[%c0, %c0_0, %c0_1] : memref<1x24x456xbf16, #tpu.memory_space<vmem>>, vector<1x24x456xbf16>
    %1 = vector.shape_cast %0 : vector<1x24x456xbf16> to vector<24x456xbf16>
    %2 = vector.extract_strided_slice %1 {offsets = [0, 0], sizes = [24, 384], strides = [1, 1]} : vector<24x456xbf16> to vector<24x384xbf16>
    %3 = vector.extract_strided_slice %1 {offsets = [0, 1], sizes = [24, 384], strides = [1, 1]} : vector<24x456xbf16> to vector<24x384xbf16>
    %4 = vector.extract_strided_slice %1 {offsets = [0, 2], sizes = [24, 384], strides = [1, 1]} : vector<24x456xbf16> to vector<24x384xbf16>
    %5 = vector.extract_strided_slice %1 {offsets = [0, 24], sizes = [24, 384], strides = [1, 1]} : vector<24x456xbf16> to vector<24x384xbf16>
    %6 = vector.extract_strided_slice %1 {offsets = [0, 25], sizes = [24, 384], strides = [1, 1]} : vector<24x456xbf16> to vector<24x384xbf16>
    %7 = vector.extract_strided_slice %1 {offsets = [0, 26], sizes = [24, 384], strides = [1, 1]} : vector<24x456xbf16> to vector<24x384xbf16>
    %8 = vector.extract_strided_slice %1 {offsets = [0, 48], sizes = [24, 384], strides = [1, 1]} : vector<24x456xbf16> to vector<24x384xbf16>
    %9 = vector.extract_strided_slice %1 {offsets = [0, 49], sizes = [24, 384], strides = [1, 1]} : vector<24x456xbf16> to vector<24x384xbf16>
    %10 = vector.extract_strided_slice %1 {offsets = [0, 50], sizes = [24, 384], strides = [1, 1]} : vector<24x456xbf16> to vector<24x384xbf16>
    %11 = tpu.concatenate %2, %3, %4, %5, %6, %7, %8, %9, %10 in 0 : vector<24x384xbf16>, vector<24x384xbf16>, vector<24x384xbf16>, vector<24x384xbf16>, vector<24x384xbf16>, vector<24x384xbf16>, vector<24x384xbf16>, vector<24x384xbf16>, vector<24x384xbf16> -> vector<216x384xbf16>
    %c0_2 = arith.constant 0 : index
    %c0_3 = arith.constant 0 : index
    %12 = vector.load %arg2[%c0_2, %c0_3] : memref<8x216xbf16, #tpu.memory_space<vmem>>, vector<8x216xbf16>
    %cst = arith.constant dense<0.000000e+00> : vector<8x384xf32>
    %13 = tpu.matmul %12, %11, %cst {dimension_numbers = #tpu.dot_dimension_numbers<[1], [0], [0], [1], [0, 0, 1, 1], [], []>} : vector<8x216xbf16>, vector<216x384xbf16>, vector<8x384xf32> -> vector<8x384xf32>
    %c0_4 = arith.constant 0 : index
    %c0_5 = arith.constant 0 : index
    %14 = vector.load %arg3[%c0_4, %c0_5] : memref<8x1xf32, #tpu.memory_space<vmem>>, vector<8x1xf32>
    %15 = vector.broadcast %14 : vector<8x1xf32> to vector<8x384xf32>
    %16 = arith.addf %13, %15 : vector<8x384xf32>
    %cst_6 = arith.constant 0.000000e+00 : f32
    %17 = vector.broadcast %cst_6 : f32 to vector<8x384xf32>
    %18 = arith.maximumf %16, %17 : vector<8x384xf32>
    %c0_7 = arith.constant 0 : index
    %c0_8 = arith.constant 0 : index
    %19 = vector.load %arg4[%c0_7, %c0_8] : memref<1x8xbf16, #tpu.memory_space<vmem>>, vector<1x8xbf16>
    %20 = arith.truncf %18 : vector<8x384xf32> to vector<8x384xbf16>
    %cst_9 = arith.constant dense<0.000000e+00> : vector<1x384xf32>
    %21 = tpu.matmul %19, %20, %cst_9 {dimension_numbers = #tpu.dot_dimension_numbers<[1], [0], [0], [1], [0, 0, 1, 1], [], []>} : vector<1x8xbf16>, vector<8x384xbf16>, vector<1x384xf32> -> vector<1x384xf32>
    %c0_10 = arith.constant 0 : index
    %c0_11 = arith.constant 0 : index
    %22 = vector.load %arg5[%c0_10, %c0_11] : memref<1x1xf32, #tpu.memory_space<vmem>>, vector<1x1xf32>
    %23 = vector.broadcast %22 : vector<1x1xf32> to vector<1x384xf32>
    %24 = arith.addf %21, %23 : vector<1x384xf32>
    %cst_12 = arith.constant 0.000000e+00 : f32
    %25 = vector.broadcast %cst_12 : f32 to vector<1x384xf32>
    %26 = arith.cmpf ogt, %24, %25 : vector<1x384xf32>
    %27 = arith.extui %26 : vector<1x384xi1> to vector<1x384xi32>
    %28 = arith.sitofp %27 : vector<1x384xi32> to vector<1x384xf32>
    %c0_13 = arith.constant 0 : index
    %c0_14 = arith.constant 0 : index
    %c0_15 = arith.constant 0 : index
    %29 = vector.load %arg6[%c0_13, %c0_14, %c0_15] : memref<1x1x384xf32, #tpu.memory_space<vmem>>, vector<1x1x384xf32>
    %30 = vector.shape_cast %29 : vector<1x1x384xf32> to vector<1x384xf32>
    %31 = vector.shape_cast %28 : vector<1x384xf32> to vector<1x1x384xf32>
    tpu.vector_store %arg6[%c0_13, %c0_14, %c0_15], %31 {strides = array<i32>} : memref<1x1x384xf32, #tpu.memory_space<vmem>>, vector<1x1x384xf32>,
    return
  }
  func.func @transform_0(%arg0: i32) -> (i32, i32, i32) {
    %c0_i32 = arith.constant 0 : i32
    %c0_i32_0 = arith.constant 0 : i32
    %c0_i32_1 = arith.constant 0 : i32
    return %arg0, %c0_i32, %c0_i32_0 : i32, i32, i32
  }
  func.func @transform_1(%arg0: i32) -> (i32, i32) {
    %c0_i32 = arith.constant 0 : i32
    %c0_i32_0 = arith.constant 0 : i32
    %c0_i32_1 = arith.constant 0 : i32
    return %c0_i32, %c0_i32_0 : i32, i32
  }
  func.func @transform_2(%arg0: i32) -> (i32, i32) {
    %c0_i32 = arith.constant 0 : i32
    %c0_i32_0 = arith.constant 0 : i32
    %c0_i32_1 = arith.constant 0 : i32
    return %c0_i32, %c0_i32_0 : i32, i32
  }
  func.func @transform_3(%arg0: i32) -> (i32, i32) {
    %c0_i32 = arith.constant 0 : i32
    %c0_i32_0 = arith.constant 0 : i32
    %c0_i32_1 = arith.constant 0 : i32
    return %c0_i32, %c0_i32_0 : i32, i32
  }
  func.func @transform_4(%arg0: i32) -> (i32, i32) {
    %c0_i32 = arith.constant 0 : i32
    %c0_i32_0 = arith.constant 0 : i32
    %c0_i32_1 = arith.constant 0 : i32
    return %c0_i32, %c0_i32_0 : i32, i32
  }
  func.func @transform_5(%arg0: i32) -> (i32, i32, i32) {
    %c0_i32 = arith.constant 0 : i32
    %c0_i32_0 = arith.constant 0 : i32
    %c0_i32_1 = arith.constant 0 : i32
    return %arg0, %c0_i32, %c0_i32_0 : i32, i32, i32
  }
}

</mosaic_0001>

<bundles_post_ra>
// kernel: _forward_impl.8
= control target key start
LH: loop header
LB: loop body
LE: loop exit
PB: predicated region body
PF: predicated region fallthrough
CT: control target
= control target key end

     0   :  { %v664_v0 = vmov 0   ;;  %vm175_vm0 = vcmask 523264   ;;  %vm309_vm1 = vcmask 261120   ;;  %vm666_vm2 = vmmov 0   ;;  %s879_s0 = inlined_call_operand.vmem [shape: bf16[192,128], index: 0, kind: input, shape index: {}]   ;;  %s880_s1 = inlined_call_operand.vmem [shape: bf16[32,192], index: 1, kind: input, shape index: {}]   ;;  %s881_s2 = inlined_call_operand.vmem [shape: f32[32,1], index: 2, kind: input, shape index: {}]   ;;  %s882_s4 = inlined_call_operand.vmem [shape: f32[64,1], index: 4, kind: input, shape index: {}]   ;;  %s883_s6 = inlined_call_operand.vmem [shape: f32[32,1], index: 6, kind: input, shape index: {}]   ;;  %s884_s8 = inlined_call_operand.vmem [shape: f32[4,1], index: 8, kind: input, shape index: {}]   ;;  %s885_s3 = inlined_call_operand.vmem [shape: bf16[64,32], index: 3, kind: input, shape index: {}]   ;;  %s886_s5 = inlined_call_operand.vmem [shape: bf16[32,64], index: 5, kind: input, shape index: {}]   ;;  %s887_s7 = inlined_call_operand.vmem [shape: bf16[4,32], index: 7, kind: input, shape index: {}]   ;;  %s888_s9 = inlined_call_operand.vmem [shape: f32[4,128], index: 9, kind: output, shape index: {}]  }
   0x1   :  { %182 = vmatprep.subr.bf16.mxu0 %v664_v0  ;;  %v640_v1 = vld [vmem:[%s879_s0] sm:$0xff]   ;;  %638 = vset.pattern.permute.xlu0 %v664_v0  ;;  %v641_v2 = vld [vmem:[%s879_s0 + $0x8] sm:$0xff]   ;;  %v642_v3 = vld [vmem:[%s879_s0 + $0x10] sm:$0xff]  }
   0x2   :  { %639 = vset.pattern.permute.xlu1 %v664_v0  ;;  %183 = vmatpush1.bf16.msra.mxu0 %v640_v1  ;;  %v643_v4 = vld [vmem:[%s879_s0 + $0x18] sm:$0xff]   ;;  %v654_v5 = vld [vmem:[%s880_s1 + $0x4] ss:$8 sps:$4 sm:$0xff]   ;;  %v63_v8 = vld [vmem:[%s881_s2 + $0x10] sm:$0xff] }
   0x3   :  { %184 = vmatprep.subr.bf16.mxu0 %v664_v0  ;;  %v644_v6 = vld [vmem:[%s879_s0 + $0x20] sm:$0xff]   ;;  %573 = vmatprep.mubr.msk.bf16.mxu0 %vm175_vm0, %v654_v5  ;;  %v62_v9 = vld [vmem:[%s881_s2 + $0x8] sm:$0xff]  ;;  %v64_v10 = vld [vmem:[%s881_s2 + $0x18] sm:$0xff] }
   0x4   :  { %v61_v7 = vld [vmem:[%s881_s2] sm:$0xff]  ;;  %77 = vperm.xlu1 %639, %v63_v8   ;;  %v645_v11 = vld [vmem:[%s879_s0 + $0x28] sm:$0xff]   ;;  %v646_v14 = vld [vmem:[%s879_s0 + $0x30] sm:$0xff]  }
   0x5   :  { %67 = vperm.xlu0 %638, %v61_v7   ;;  %v241_v12 = vld [vmem:[%s882_s4] sm:$0xff]  ;;  %v242_v13 = vld [vmem:[%s882_s4 + $0x8] sm:$0xff]  ;;  %v243_v15 = vld [vmem:[%s882_s4 + $0x10] sm:$0xff] }
   0x6   :  { %185 = vmatpush1.bf16.msra.mxu0 %v641_v2  ;;  %v244_v16 = vld [vmem:[%s882_s4 + $0x18] sm:$0xff]  ;;  %v245_v18 = vld [vmem:[%s882_s4 + $0x20] sm:$0xff]  ;;  %v246_v19 = vld [vmem:[%s882_s4 + $0x28] sm:$0xff] }
   0x7   :  { %186 = vmatprep.subr.bf16.mxu0 %v664_v0  ;;  %v647_v17 = vld [vmem:[%s879_s0 + $0x38] sm:$0xff]   ;;  %v648_v20 = vld [vmem:[%s879_s0 + $0x40] sm:$0xff]   ;;  %v247_v21 = vld [vmem:[%s882_s4 + $0x30] sm:$0xff] }
   0x8   :  { %82 = vperm.xlu1 %639, %v64_v10   ;;  %v248_v22 = vld [vmem:[%s882_s4 + $0x38] sm:$0xff]  ;;  %v649_v23 = vld [vmem:[%s879_s0 + $0x48] sm:$0xff]   ;;  %v472_v24 = vld [vmem:[%s883_s6] sm:$0xff] }
   0x9   :  { %72 = vperm.xlu0 %638, %v62_v9   ;;  %v473_v25 = vld [vmem:[%s883_s6 + $0x8] sm:$0xff]  ;;  %v650_v26 = vld [vmem:[%s879_s0 + $0x50] sm:$0xff]   ;;  %v475_v28 = vld [vmem:[%s883_s6 + $0x18] sm:$0xff] }
   0xa   :  { %187 = vmatpush1.bf16.msra.mxu0 %v642_v3  ;;  %v474_v27 = vld [vmem:[%s883_s6 + $0x10] sm:$0xff]  ;;  %v651_v29 = vld [vmem:[%s879_s0 + $0x58] sm:$0xff]   ;;  %v652_v30 = vld [vmem:[%s880_s1] ss:$8 sps:$4 sm:$0xff]  }
   0xb   :  { %188 = vmatprep.subr.bf16.mxu0 %v664_v0  ;;  %v503_v31 = vld [vmem:[%s884_s8] sm:$0xf]  ;;  %v655_v32 = vld [vmem:[%s880_s1 + $0x14] ss:$8 sps:$4 sm:$0xff]   ;;  %v657_v33 = vld [vmem:[%s880_s1 + $0x10] ss:$8 sps:$4 sm:$0xff]  }
   0xc   :  { %256 = vperm.xlu1 %639, %v242_v13   ;;  %v658_v34 = vld [vmem:[%s885_s3] sm:$0xff]   ;;  %v659_v53 = vld [vmem:[%s885_s3 + $0x8] sm:$0xff]   ;;  %v660_v54 = vld [vmem:[%s885_s3 + $0x10] sm:$0xff]  }
   0xd   :  { %251 = vperm.xlu0 %638, %v241_v12   ;;  %607 = vmatprep.mubr.msk.bf16.mxu1 %vm309_vm1, %v658_v34  ;;  %v661_v55 = vld [vmem:[%s885_s3 + $0x18] sm:$0xff]   ;;  %v662_v56 = vld [vmem:[%s886_s5] sm:$0xff]  }
   0xe   :  { %189 = vmatpush1.bf16.msra.mxu0 %v643_v4 }
   0xf   :  { %190 = vmatprep.subr.bf16.mxu0 %v664_v0 }
  0x10   :  { %266 = vperm.xlu1 %639, %v244_v16  }
  0x11   :  { %261 = vperm.xlu0 %638, %v243_v15  }
  0x12   :  { %191 = vmatpush1.bf16.msra.mxu0 %v644_v6 }
  0x13   :  { %192 = vmatprep.subr.bf16.mxu0 %v664_v0 }
  0x14   :  { %276 = vperm.xlu1 %639, %v246_v19  }
  0x15   :  { %271 = vperm.xlu0 %638, %v245_v18  }
  0x16   :  { %193 = vmatpush1.bf16.msra.mxu0 %v645_v11 }
  0x17   :  { %194 = vmatprep.subr.bf16.mxu0 %v664_v0 }
  0x18   :  { %286 = vperm.xlu1 %639, %v248_v22  }
  0x19   :  { %281 = vperm.xlu0 %638, %v247_v21  }
  0x1a   :  { %195 = vmatpush1.bf16.msra.mxu0 %v646_v14 }
  0x1b   :  { %196 = vmatprep.subr.bf16.mxu0 %v664_v0 }
  0x1c   :  { %483 = vperm.xlu1 %639, %v473_v25  }
  0x1d   :  { %478 = vperm.xlu0 %638, %v472_v24  }
  0x1e   :  { %197 = vmatpush1.bf16.msra.mxu0 %v647_v17 }
  0x1f   :  { %198 = vmatprep.subr.bf16.mxu0 %v664_v0 }
  0x20   :  { %493 = vperm.xlu1 %639, %v475_v28  }
  0x21   :  { %488 = vperm.xlu0 %638, %v474_v27  }
  0x22   :  { %199 = vmatpush1.bf16.msra.mxu0 %v648_v20 }
  0x23   :  { %200 = vmatprep.subr.bf16.mxu0 %v664_v0 }
  0x25   :  { %506 = vperm.xlu0 %638, %v503_v31  }
  0x26   :  { %201 = vmatpush1.bf16.msra.mxu0 %v649_v23 }
  0x27   :  { %202 = vmatprep.subr.bf16.mxu0 %v664_v0 }
  0x2a   :  { %203 = vmatpush1.bf16.msra.mxu0 %v650_v26 }
  0x2b   :  { %204 = vmatprep.subr.bf16.mxu0 %v664_v0 }
  0x2e   :  { %205 = vmatpush1.bf16.msra.mxu0 %v651_v29  ;;  %v663_v29 = vld [vmem:[%s886_s5 + $0x8] sm:$0xff]  }
  0x31   :  { %215 = vmatmul.mubr.bf16.vlgmr.msra.gmra.mrb[0].mxu0 %v652_v30  ;;  %v665_v30 = vmov 0.0  }
  0x32   :  { %574 = vmatprep.mubr.msk.bf16.mxu0 %vm175_vm0, %v655_v32 }
  0x39   :  { %223 = vmatmul.mubr.bf16.gmra.mrb[4].mxu0 %v657_v33 }
  0x83   :  { %v78_v43 = vpop.permute.xlu1 %77 }
  0x84   :  { %v68_v35 = vpop.permute.xlu0 %67 }
  0x87   :  { %v83_v47 = vpop.permute.xlu1 %82 }
  0x88   :  { %v73_v38 = vpop.permute.xlu0 %72 }
  0x8b   :  { %v257_v58 = vpop.permute.xlu1 %256 }
  0x8c   :  { %v252_v57 = vpop.permute.xlu0 %251 }
  0x8f   :  { %v267_v60 = vpop.permute.xlu1 %266 }
  0x90   :  { %v262_v59 = vpop.permute.xlu0 %261 }
  0x93   :  { %v277_v5 = vpop.permute.xlu1 %276 }
  0x94   :  { %v272_v0 = vpop.permute.xlu0 %271 }
  0x97   :  { %v287_v17 = vpop.permute.xlu1 %286 }
  0x98   :  { %v282_v12 = vpop.permute.xlu0 %281 }
  0x9b   :  { %v484_v32 = vpop.permute.xlu1 %483 }
  0x9c   :  { %v479_v31 = vpop.permute.xlu0 %478 }
 0x104   :  { %v216_v36 = vpop.f32.mrb[0].mxu0 }
 0x105   :  { %v218_v37 = vpop.f32.mrb[1].mxu0  ;;  %v836_v40 = vadd.f32 %v216_v36, %v68_v35 }
 0x106   :  { %v219_v39 = vpop.f32.mrb[2].mxu0 }
 0x107   :  { %v838_v41 = vadd.f32 %v219_v39, %v73_v38  ;;  %v221_v42 = vpop.f32.mrb[3].mxu0 }
 0x108   :  { %v489_v42 = vpop.permute.xlu0 %488 }
 0x109   :  { %v231_v44 = vpack.c.bf16 %v838_v41, %v836_v40 }
 0x10b   :  { %603 = vmatprep.subr.bf16.mxu1 %v231_v44 }
 0x10c   :  { %v224_v45 = vpop.f32.mrb[4].mxu0  ;;  %604 = vmatpush3.bf16.msra.mxu1 %v231_v44 }
 0x10d   :  { %v226_v46 = vpop.f32.mrb[5].mxu0  ;;  %v842_v49 = vadd.f32 %v224_v45, %v78_v43  ;;  %v494_v43 = vpop.permute.xlu1 %493 }
 0x10e   :  { %v227_v48 = vpop.f32.mrb[6].mxu0 }
 0x10f   :  { %v844_v50 = vadd.f32 %v227_v48, %v83_v47  ;;  %v229_v51 = vpop.f32.mrb[7].mxu0 }
 0x111   :  { %v232_v52 = vpack.c.bf16 %v844_v50, %v842_v49 }
 0x113   :  { %605 = vmatprep.subr.bf16.mxu1 %v232_v52 }
 0x114   :  { %606 = vmatpush3.bf16.msra.mxu1 %v232_v52 }
 0x117   :  { %608 = vmatmul.mubr.msk.bf16.vlgmr.msra.gmra.mrb[0].mxu1 %vm309_vm1, %v659_v53 }
 0x118   :  { %611 = vmatprep.mubr.msk.bf16.mxu1 %vm309_vm1, %v660_v54 }
 0x11f   :  { %612 = vmatmul.mubr.msk.bf16.gmra.mrb[4].mxu1 %vm309_vm1, %v661_v55 }
 0x120   :  { %623 = vmatprep.mubr.msk.bf16.mxu1 %vm175_vm0, %v662_v56 }
 0x1ea   :  { %v609_v61 = vpop.f32.mrb[0].mxu1 }
 0x1eb   :  { %v365_v62 = vadd.f32 %v609_v61, %v262_v59  ;;  %v356_v63 = vpop.f32.mrb[1].mxu1 }
 0x1ec   :  { %v357_v1 = vadd.f32 %v356_v63, %v252_v57  ;;  %v610_v2 = vpop.f32.mrb[2].mxu1 }
 0x1ed   :  { %v368_v3 = vadd.f32 %v610_v2, %v267_v60  ;;  %v359_v4 = vpop.f32.mrb[3].mxu1  ;;  %v389_v7 = vmax.f32 %v365_v62, 0.0 }
 0x1ee   :  { %v360_v6 = vadd.f32 %v359_v4, %v257_v58  ;;  %v387_v9 = vmax.f32 %v357_v1, 0.0 }
 0x1ef   :  { %v390_v8 = vmax.f32 %v368_v3, 0.0 }
 0x1f0   :  { %v388_v10 = vmax.f32 %v360_v6, 0.0 }
 0x1f1   :  { %v400_v11 = vpack.c.bf16 %v390_v8, %v389_v7 }
 0x1f2   :  { %v399_v13 = vpack.c.bf16 %v388_v10, %v387_v9  ;;  %v613_v14 = vpop.f32.mrb[4].mxu1 }
 0x1f3   :  { %v381_v15 = vadd.f32 %v613_v14, %v282_v12  ;;  %v372_v16 = vpop.f32.mrb[5].mxu1 }
 0x1f4   :  { %v373_v18 = vadd.f32 %v372_v16, %v272_v0  ;;  %v614_v19 = vpop.f32.mrb[6].mxu1  ;;  %615 = vmatprep.subr.bf16.mxu1 %v399_v13 }
 0x1f5   :  { %v384_v20 = vadd.f32 %v614_v19, %v287_v17  ;;  %v375_v21 = vpop.f32.mrb[7].mxu1  ;;  %616 = vmatpush3.bf16.msra.mxu1 %v399_v13  ;;  %v393_v23 = vmax.f32 %v381_v15, 0.0 }
 0x1f6   :  { %v376_v22 = vadd.f32 %v375_v21, %v277_v5  ;;  %617 = vmatprep.subr.bf16.mxu1 %v400_v11  ;;  %v391_v25 = vmax.f32 %v373_v18, 0.0 }
 0x1f7   :  { %v394_v24 = vmax.f32 %v384_v20, 0.0 }
 0x1f8   :  { %v392_v26 = vmax.f32 %v376_v22, 0.0 }
 0x1f9   :  { %v402_v27 = vpack.c.bf16 %v394_v24, %v393_v23  ;;  %618 = vmatpush3.bf16.msra.mxu1 %v400_v11 }
 0x1fa   :  { %v401_v28 = vpack.c.bf16 %v392_v26, %v391_v25 }
 0x1fc   :  { %619 = vmatprep.subr.bf16.mxu1 %v401_v28 }
 0x1fd   :  { %620 = vmatpush3.bf16.msra.mxu1 %v401_v28 }
 0x1fe   :  { %621 = vmatprep.subr.bf16.mxu1 %v402_v27 }
 0x201   :  { %622 = vmatpush3.bf16.msra.mxu1 %v402_v27 }
 0x202   :  { %627 = vmatprep.subr.bf16.mxu1 %v665_v30 }
 0x204   :  { %624 = vmatmul.mubr.msk.bf16.vlgmr.msra.gmra.mrb[8].mxu1 %vm175_vm0, %v663_v29 }
 0x205   :  { %631 = vmatprep.mubr.msk.bf16.mxu1 %vm666_vm2, %v665_v30 }
 0x2d7   :  { %v625_v33 = vpop.f32.mrb[8].mxu1 }
 0x2d8   :  { %v470_v34 = vadd.f32 %v625_v33, %v842_v49  ;;  %v453_v35 = vpop.f32.mrb[9].mxu1  ;;  %v507_v49 = vpop.permute.xlu0 %506 }
 0x2d9   :  { %v468_v36 = vadd.f32 %v453_v35, %v836_v40  ;;  %v626_v37 = vpop.f32.mrb[10].mxu1  ;;  %v500_v40 = vld [vmem:[%s887_s7] sm:$0x3] }
 0x2da   :  { %v471_v38 = vadd.f32 %v626_v37, %v844_v50  ;;  %v456_v39 = vpop.f32.mrb[11].mxu1  ;;  %v498_v45 = vadd.f32 %v489_v42, %v470_v34 }
 0x2db   :  { %v469_v44 = vadd.f32 %v456_v39, %v838_v41  ;;  %v496_v47 = vadd.f32 %v479_v31, %v468_v36 }
 0x2dc   :  { %v499_v46 = vadd.f32 %v494_v43, %v471_v38 }
 0x2dd   :  { %v497_v48 = vadd.f32 %v484_v32, %v469_v44 }
 0x2de   :  { %v502_v51 = vpack.c.bf16 %v499_v46, %v498_v45 }
 0x2df   :  { %v501_v52 = vpack.c.bf16 %v497_v48, %v496_v47 }
 0x2e1   :  { %628 = vmatpush3.bf16.msra.mxu1 %v501_v52 }
 0x2e2   :  { %629 = vmatprep.subr.bf16.mxu1 %v665_v30 }
 0x2e5   :  { %630 = vmatpush3.bf16.msra.mxu1 %v502_v51 }
 0x2e8   :  { %632 = vmatmul.mubr.msk.bf16.vlgmr.msra.gmra.mrb[12].mxu1 %vm309_vm1, %v500_v40 }
 0x3bb   :  { %v546_v50 = vpop.f32.mrb[12].mxu1 }
 0x3bc   :  { %v547_v53 = vadd.f32 %v546_v50, %v507_v49  ;;  %v633_v54 = vpop.f32.mrb[13].mxu1 }
 0x3bd   :  { %v549_v41 = vpop.f32.mrb[14].mxu1 }
 0x3be   :  { %552 = vst [vmem:[%s888_s9] sm:$0xf] %v547_v53  ;;  %v634_v55 = vpop.f32.mrb[15].mxu1 }

// kernel: _forward_impl.9
= control target key start
LH: loop header
LB: loop body
LE: loop exit
PB: predicated region body
PF: predicated region fallthrough
CT: control target
= control target key end

     0   :  { %s199_s6 = smov 0   ;;  %s219_s0 = inlined_call_operand.vmem [shape: f32[16,128], index: 0, kind: input, shape index: {}]   ;;  %s220_s1 = inlined_call_operand.vmem [shape: f32[16,128], index: 1, kind: output, shape index: {}]  }
   0x1 LB: > { %s173_s7 = sadd.s32 4294967295, %s201_s6   ;;  %p177_p0 = scmp.ge.s32.totalorder %s201_s6, 1  ;;  %s201_s6 = sphi %s199_s6, %s11_s6  }
   0x2   : > { %p86_p1 = scmp.lt.s32.totalorder %s201_s6, 3 }
   0x4   : > { %p87_p2 = pnand %p177_p0, %p86_p1 }
   0x5   : > { %p104_p3 = scmp.lt.s32.totalorder (!%p87_p2), %s173_s7, 1 }
   0x6   : > { %90 = sbr.rel (%p87_p2) target bundleno = 44 (0x2c), region = 24 }
   0xd   : > { %s222_s7 = smov (!%p104_p3, %s173_s7), 1 }
   0xe   : > { %s178_s8 = sshll.u32 %s222_s7, 3 }
   0xf   : > { %s107_s11 = scalar_lea.vmem %s219_s0, %s178_s8  ;;  %s111_s14 = scalar_lea.vmem %s220_s1, %s178_s8 }
  0x10   : > { %v112_v0 = vld [vmem:[%s107_s11] sm:$0xff] }
  0x11   : > { %v180_v1 = vmul.f32 -1.442695, %v112_v0 }
  0x13   : > { %191 = vpow2.f32 %v180_v1 }
  0x1d   : > { %v192_v2 = vpop.eup %191 }
  0x1e   : > { %v116_v3 = vadd.f32 1.0, %v192_v2 }
  0x20   : > { %193 = vrcp.f32 %v116_v3 }
  0x2a   : > { %v194_v4 = vpop.eup %193 }
  0x2b   : > { %119 = vst [vmem:[%s111_s14] sm:$0xff] %v194_v4 }
  0x2c PF: > { %s11_s6 = sadd.s32 1, %s201_s6  }
  0x2d   : > { %p8_p4 = scmp.ge.s32.totalorder %s11_s6, 4  }
  0x2f   :  { %10 = sbr.rel (!%p8_p4) target bundleno = 1 (0x1), region = 54 }

// kernel: _forward_impl.5
= control target key start
LH: loop header
LB: loop body
LE: loop exit
PB: predicated region body
PF: predicated region fallthrough
CT: control target
= control target key end

     0   :  { %s1016_s21 = smov 0   ;;  %s1247_s0 = inlined_call_operand.vmem [shape: bf16[2,8,456], index: 0, kind: input, shape index: {}]   ;;  %s1248_s1 = inlined_call_operand.vmem [shape: bf16[8,72], index: 1, kind: input, shape index: {}]   ;;  %s1249_s2 = inlined_call_operand.vmem [shape: f32[8,1], index: 2, kind: input, shape index: {}]   ;;  %s1250_s3 = inlined_call_operand.vmem [shape: bf16[8,72], index: 3, kind: input, shape index: {}]   ;;  %s1251_s4 = inlined_call_operand.vmem [shape: f32[8,1], index: 4, kind: input, shape index: {}]   ;;  %s1252_s5 = inlined_call_operand.vmem [shape: f32[1,384], index: 5, kind: input, shape index: {}]   ;;  %s1253_s6 = inlined_call_operand.vmem [shape: bf16[2,8,384], index: 6, kind: output, shape index: {}]  }
   0x1 LB: > { %s869_s22 = sadd.s32 4294967295, %s967_s21   ;;  %p873_p0 = scmp.ge.s32.totalorder %s967_s21, 1  ;;  %s967_s21 = sphi %s1016_s21, %s16_s21  }
   0x2   : > { %p212_p1 = scmp.lt.s32.totalorder %s967_s21, 3 }
   0x4   : > { %p213_p2 = pnand %p873_p0, %p212_p1 }
   0x5   : > { %p242_p3 = scmp.lt.s32.totalorder (!%p213_p2), %s869_s22, 1  ;;  %v969_v0 = vmov (!%p213_p2), 0.0   ;;  %s970_s27 = smov (!%p213_p2), 127   ;;  %v977_v7 = vmov (!%p213_p2), 0   ;;  %vm978_vm0 = vmmov (!%p213_p2), 0   ;;  %v411_v8 = vld [vmem:[%s1249_s2] sm:$0xff] (!%p213_p2) }
   0x6   : > { %216 = sbr.rel (%p213_p2) target bundleno = 936 (0x3a8), region = 44  ;;  %906 = vmatprep.subr.bf16.mxu1 (!%p213_p2), %v969_v0  ;;  %s971_s28 = smov (!%p213_p2), 126   ;;  %462 = vmatprep.mubr.bf16.mxu0 (!%p213_p2), %v977_v7  ;;  %vm273_vm1 = vcmask (!%p213_p2), 1039360   ;;  %vm361_vm2 = vcmask (!%p213_p2), 1043456   ;;  %vm285_vm3 = vcmask (!%p213_p2), 1031168   ;;  %vm297_vm4 = vcmask (!%p213_p2), 850944  }
   0x7   : > { %s972_s29 = smov (!%p213_p2), 104   ;;  %s973_s30 = smov (!%p213_p2), 103   ;;  %916 = vmatprep.mubr.msk.bf16.mxu1 (!%p213_p2), %vm978_vm0, %v969_v0  ;;  %955 = vset.pattern.permute.xlu0 (!%p213_p2), %v977_v7  ;;  %vm309_vm5 = vcmask (!%p213_p2), 842752   ;;  %vm321_vm6 = vcmask (!%p213_p2), 834560   ;;  %vm333_vm7 = vcmask (!%p213_p2), 654336   ;;  %vm345_vm8 = vcmask (!%p213_p2), 646144  }
   0x8   : > { %s974_s7 = smov (!%p213_p2), 102   ;;  %s975_s8 = smov (!%p213_p2), 80   ;;  %956 = vset.pattern.permute.xlu1 (!%p213_p2), %v977_v7  ;;  %vm357_vm9 = vcmask (!%p213_p2), 637952   ;;  %vm417_vm10 = vcmask (!%p213_p2), 588800   ;;  %vm546_vm11 = vcmask (!%p213_p2), 203776  }
   0x9   : > { %s976_s9 = smov (!%p213_p2), 79   ;;  %s979_s10 = smov (!%p213_p2), 78  }
   0xa   : > { %s980_s17 = smov (!%p213_p2), 25  }
   0xd   : > { %s1255_s22 = smov (!%p242_p3, %s869_s22), 1 }
   0xe   : > { %s891_s23 = sshll.u32 %s1255_s22, 4  ;;  %s934_s24 = smul.u32 12, %s1255_s22 }
   0xf   : > { %s246_s26 = scalar_lea.vmem %s1247_s0, %s891_s23 }
  0x10   : > { %v253_v1 = vld [vmem:[%s246_s26] sm:$0xff]  ;;  %v254_v2 = vld [vmem:[%s246_s26 + $0x8] sm:$0xff] }
  0x11   : > { %v878_v3 = vcombine.high %v253_v1, %v253_v1  ;;  %v1031_v4 = vcombine.low %v253_v1, %v253_v1  ;;  %v879_v5 = vcombine.low %v254_v2, %v254_v2  ;;  %v880_v6 = vcombine.high %v254_v2, %v254_v2 }
  0x13   : > { %267 = vrot.lane.b32.xlu0 %v878_v3, %s970_s27  ;;  %265 = vrot.lane.b32.xlu1 %v1031_v4, %s970_s27 }
  0x17   : > { %269 = vrot.lane.b32.xlu0 %v879_v5, %s970_s27  ;;  %271 = vrot.lane.b32.xlu1 %v880_v6, %s970_s27 }
  0x1b   : > { %279 = vrot.lane.b32.xlu0 %v878_v3, %s971_s28  ;;  %281 = vrot.lane.b32.xlu1 %v879_v5, %s971_s28 }
  0x1f   : > { %291 = vrot.lane.b32.xlu0 %v878_v3, %s972_s29  ;;  %293 = vrot.lane.b32.xlu1 %v879_v5, %s972_s29 }
  0x23   : > { %277 = vrot.lane.b32.xlu0 %v1031_v4, %s971_s28  ;;  %289 = vrot.lane.b32.xlu1 %v1031_v4, %s972_s29 }
  0x27   : > { %283 = vrot.lane.b32.xlu0 %v880_v6, %s971_s28  ;;  %295 = vrot.lane.b32.xlu1 %v880_v6, %s972_s29 }
  0x2b   : > { %303 = vrot.lane.b32.xlu0 %v878_v3, %s973_s30  ;;  %305 = vrot.lane.b32.xlu1 %v879_v5, %s973_s30 }
  0x2f   : > { %315 = vrot.lane.b32.xlu0 %v878_v3, %s974_s7  ;;  %317 = vrot.lane.b32.xlu1 %v879_v5, %s974_s7 }
  0x33   : > { %301 = vrot.lane.b32.xlu0 %v1031_v4, %s973_s30  ;;  %313 = vrot.lane.b32.xlu1 %v1031_v4, %s974_s7 }
  0x37   : > { %307 = vrot.lane.b32.xlu0 %v880_v6, %s973_s30  ;;  %319 = vrot.lane.b32.xlu1 %v880_v6, %s974_s7 }
  0x3b   : > { %327 = vrot.lane.b32.xlu0 %v878_v3, %s975_s8  ;;  %329 = vrot.lane.b32.xlu1 %v879_v5, %s975_s8 }
  0x3f   : > { %339 = vrot.lane.b32.xlu0 %v878_v3, %s976_s9  ;;  %341 = vrot.lane.b32.xlu1 %v879_v5, %s976_s9 }
  0x43   : > { %325 = vrot.lane.b32.xlu0 %v1031_v4, %s975_s8  ;;  %337 = vrot.lane.b32.xlu1 %v1031_v4, %s976_s9 }
  0x47   : > { %331 = vrot.lane.b32.xlu0 %v880_v6, %s975_s8  ;;  %343 = vrot.lane.b32.xlu1 %v880_v6, %s976_s9 }
  0x4b   : > { %349 = vrot.lane.b32.xlu0 %v1031_v4, %s979_s10  ;;  %351 = vrot.lane.b32.xlu1 %v878_v3, %s979_s10 }
  0x4f   : > { %353 = vrot.lane.b32.xlu0 %v879_v5, %s979_s10  ;;  %355 = vrot.lane.b32.xlu1 %v880_v6, %s979_s10 }
  0x53   : > { %414 = vperm.xlu0 %955, %v411_v8  }
  0x85   : > { %v268_v9 = vpop.permute.xlu0 %267  ;;  %v266_v10 = vpop.permute.xlu1 %265 }
  0x86   : > { %v274_v11 = vsel %vm273_vm1, %v266_v10, %v268_v9 }
  0x87   : > { %v364_v18 = vsel %vm361_vm2, %v1031_v4, %v274_v11 }
  0x89   : > { %v270_v12 = vpop.permute.xlu0 %269  ;;  %v272_v13 = vpop.permute.xlu1 %271 }
  0x8a   : > { %v275_v14 = vsel %vm273_vm1, %v268_v9, %v270_v12  ;;  %v276_v15 = vsel %vm273_vm1, %v270_v12, %v272_v13 }
  0x8b   : > { %v368_v16 = vsel %vm361_vm2, %v878_v3, %v275_v14  ;;  %v372_v17 = vsel %vm361_vm2, %v879_v5, %v276_v15 }
  0x8c   : > { %430 = vmatprep.subr.bf16.mxu0 %v368_v16  ;;  %907 = vmatpush3.bf16.msra.mxu1 %v372_v17  ;;  %v410_v17 = vld [vmem:[%s1248_s1] sm:$0xf] }
  0x8d   : > { %v280_v19 = vpop.permute.xlu0 %279  ;;  %431 = vmatpush1.bf16.msra.mxu0 %v364_v18  ;;  %v282_v20 = vpop.permute.xlu1 %281  ;;  %908 = vmatprep.subr.bf16.mxu1 %v969_v0  ;;  %v516_v18 = vlaneseq }
  0x8e   : > { %v287_v23 = vsel %vm285_vm3, %v280_v19, %v282_v20 }
  0x91   : > { %v292_v21 = vpop.permute.xlu0 %291  ;;  %v294_v22 = vpop.permute.xlu1 %293 }
  0x92   : > { %v299_v24 = vsel %vm297_vm4, %v292_v21, %v294_v22 }
  0x93   : > { %v380_v25 = vsel %vm361_vm2, %v287_v23, %v299_v24  ;;  %v514_v23 = vld [vmem:[%s1252_s5] sm:$0x7] }
  0x94   : > { %432 = vmatprep.subr.bf16.mxu0 %v380_v25 }
  0x95   : > { %v278_v26 = vpop.permute.xlu0 %277  ;;  %v290_v27 = vpop.permute.xlu1 %289 }
  0x96   : > { %v286_v28 = vsel %vm285_vm3, %v278_v26, %v280_v19  ;;  %v298_v29 = vsel %vm297_vm4, %v290_v27, %v292_v21  ;;  %v517_v19 = vshrl.u32 %v516_v18, 7 }
  0x97   : > { %v376_v30 = vsel %vm361_vm2, %v286_v28, %v298_v29 }
  0x98   : > { %433 = vmatpush1.bf16.msra.mxu0 %v376_v30  ;;  %v526_v21 = vsub.s32 2, %v517_v19  ;;  %v522_v24 = vsub.s32 1, %v517_v19 }
  0x99   : > { %v284_v31 = vpop.permute.xlu0 %283  ;;  %v296_v32 = vpop.permute.xlu1 %295 }
  0x9a   : > { %v288_v33 = vsel %vm285_vm3, %v282_v20, %v284_v31  ;;  %v300_v34 = vsel %vm297_vm4, %v294_v22, %v296_v32  ;;  %v518_v20 = vsub.s32 0, %v517_v19  ;;  %v527_v30 = vrot.slane %v514_v23, %v526_v21 }
  0x9b   : > { %v384_v35 = vsel %vm361_vm2, %v288_v33, %v300_v34 }
  0x9c   : > { %909 = vmatpush3.bf16.msra.mxu1 %v384_v35  ;;  %v519_v28 = vrot.slane %v514_v23, %v518_v20 }
  0x9d   : > { %v304_v36 = vpop.permute.xlu0 %303  ;;  %v306_v37 = vpop.permute.xlu1 %305  ;;  %910 = vmatprep.subr.bf16.mxu1 %v969_v0 }
  0x9e   : > { %v311_v40 = vsel %vm309_vm5, %v304_v36, %v306_v37 }
  0xa1   : > { %v316_v38 = vpop.permute.xlu0 %315  ;;  %v318_v39 = vpop.permute.xlu1 %317 }
  0xa2   : > { %v323_v41 = vsel %vm321_vm6, %v316_v38, %v318_v39 }
  0xa3   : > { %v392_v42 = vsel %vm361_vm2, %v311_v40, %v323_v41 }
  0xa4   : > { %434 = vmatprep.subr.bf16.mxu0 %v392_v42 }
  0xa5   : > { %v302_v43 = vpop.permute.xlu0 %301  ;;  %v314_v44 = vpop.permute.xlu1 %313 }
  0xa6   : > { %v310_v45 = vsel %vm309_vm5, %v302_v43, %v304_v36  ;;  %v322_v46 = vsel %vm321_vm6, %v314_v44, %v316_v38 }
  0xa7   : > { %v388_v47 = vsel %vm361_vm2, %v310_v45, %v322_v46 }
  0xa8   : > { %435 = vmatpush1.bf16.msra.mxu0 %v388_v47 }
  0xa9   : > { %v308_v48 = vpop.permute.xlu0 %307  ;;  %v320_v49 = vpop.permute.xlu1 %319 }
  0xaa   : > { %v312_v50 = vsel %vm309_vm5, %v306_v37, %v308_v48  ;;  %v324_v51 = vsel %vm321_vm6, %v318_v39, %v320_v49  ;;  %v523_v37 = vrot.slane %v514_v23, %v522_v24 }
  0xab   : > { %v396_v52 = vsel %vm361_vm2, %v312_v50, %v324_v51 }
  0xac   : > { %911 = vmatpush3.bf16.msra.mxu1 %v396_v52 }
  0xad   : > { %v328_v53 = vpop.permute.xlu0 %327  ;;  %v330_v54 = vpop.permute.xlu1 %329  ;;  %912 = vmatprep.subr.bf16.mxu1 %v969_v0 }
  0xae   : > { %v335_v57 = vsel %vm333_vm7, %v328_v53, %v330_v54 }
  0xb1   : > { %v340_v55 = vpop.permute.xlu0 %339  ;;  %v342_v56 = vpop.permute.xlu1 %341 }
  0xb2   : > { %v347_v58 = vsel %vm345_vm8, %v340_v55, %v342_v56 }
  0xb3   : > { %v404_v59 = vsel %vm361_vm2, %v335_v57, %v347_v58  ;;  %v697_v58 = vld [vmem:[%s1251_s4] sm:$0xff] }
  0xb4   : > { %436 = vmatprep.subr.bf16.mxu0 %v404_v59 }
  0xb5   : > { %v326_v60 = vpop.permute.xlu0 %325  ;;  %v338_v61 = vpop.permute.xlu1 %337 }
  0xb6   : > { %v334_v62 = vsel %vm333_vm7, %v326_v60, %v328_v53  ;;  %v346_v63 = vsel %vm345_vm8, %v338_v61, %v340_v55 }
  0xb7   : > { %v400_v1 = vsel %vm361_vm2, %v334_v62, %v346_v63 }
  0xb8   : > { %437 = vmatpush1.bf16.msra.mxu0 %v400_v1 }
  0xb9   : > { %v332_v2 = vpop.permute.xlu0 %331  ;;  %v344_v3 = vpop.permute.xlu1 %343 }
  0xba   : > { %v336_v4 = vsel %vm333_vm7, %v330_v54, %v332_v2  ;;  %v348_v5 = vsel %vm345_vm8, %v342_v56, %v344_v3 }
  0xbb   : > { %v408_v6 = vsel %vm361_vm2, %v336_v4, %v348_v5 }
  0xbc   : > { %913 = vmatpush3.bf16.msra.mxu1 %v408_v6 }
  0xbd   : > { %v350_v8 = vpop.permute.xlu0 %349  ;;  %v352_v9 = vpop.permute.xlu1 %351  ;;  %914 = vmatprep.subr.bf16.mxu1 %v969_v0 }
  0xbe   : > { %v358_v10 = vsel %vm357_vm9, %v350_v8, %v352_v9 }
  0xbf   : > { %v422_v15 = vsel %vm361_vm2, %v358_v10, 0 }
  0xc1   : > { %v354_v11 = vpop.permute.xlu0 %353  ;;  %v356_v12 = vpop.permute.xlu1 %355 }
  0xc2   : > { %v359_v13 = vsel %vm357_vm9, %v352_v9, %v354_v11  ;;  %v360_v14 = vsel %vm357_vm9, %v354_v11, %v356_v12 }
  0xc3   : > { %881 = vmatprep.subr.msk.bf16.mxu0 %vm361_vm2, %v359_v13  ;;  %v428_v16 = vsel %vm361_vm2, %v360_v14, 0 }
  0xc4   : > { %439 = vmatpush1.bf16.msra.mxu0 %v422_v15  ;;  %915 = vmatpush3.bf16.msra.mxu1 %v428_v16 }
  0xc5   : > { %920 = vmatprep.subr.bf16.mxu1 %v969_v0 }
  0xc7   : > { %882 = vmatmul.mubr.msk.bf16.vlgmr.msra.gmra.mrb[0].mxu0 %vm417_vm10, %v410_v17  ;;  %917 = vmatmul.mubr.msk.bf16.vlgmr.msra.gmra.mrb[0].mxu1 %vm417_vm10, %v410_v17 }
  0xc8   : > { %747 = vmatprep.mubr.bf16.mxu0 %v977_v7  ;;  %930 = vmatprep.mubr.msk.bf16.mxu1 %vm978_vm0, %v969_v0 }
  0xd2   : > { %v415_v22 = vpop.permute.xlu0 %414 }
 0x19a   : > { %v464_v25 = vpop.f32.mrb[0].mxu0  ;;  %v505_v26 = vpop.f32.mrb[0].mxu1 }
 0x19b   : > { %v465_v27 = vadd.f32 %v464_v25, %v415_v22  ;;  %v506_v29 = vadd.f32 %v505_v26, %v415_v22  ;;  %v466_v7 = vpop.f32.mrb[1].mxu0  ;;  %v918_v31 = vpop.f32.mrb[1].mxu1 }
 0x19c   : > { %v467_v32 = vadd.f32 %v466_v7, %v415_v22  ;;  %v468_v33 = vpop.f32.mrb[2].mxu0  ;;  %v508_v34 = vpop.f32.mrb[2].mxu1 }
 0x19d   : > { %v511_v35 = vmax.f32 %v465_v27, 0.0  ;;  %v513_v36 = vmax.f32 %v506_v29, 0.0  ;;  %v469_v38 = vpop.f32.mrb[3].mxu0  ;;  %v919_v39 = vpop.f32.mrb[3].mxu1 }
 0x19e   : > { %v512_v40 = vmax.f32 %v467_v32, 0.0 }
 0x19f   : > { %v531_v41 = vmul.f32 %v519_v28, %v511_v35  ;;  %v533_v42 = vmul.f32 %v527_v30, %v513_v36 }
 0x1a0   : > { %v532_v45 = vmul.f32 %v523_v37, %v512_v40 }
 0x1a1   : > { %v534_v43 = vpack.c.bf16 %v531_v41, %v531_v41  ;;  %v536_v44 = vpack.c.bf16 %v533_v42, %v533_v42 }
 0x1a2   : > { %v535_v46 = vpack.c.bf16 %v532_v45, %v532_v45 }
 0x1a3   : > { %540 = vrot.lane.b32.xlu1 %v534_v43, %s980_s17  ;;  %544 = vrot.lane.b32.xlu0 %v536_v44, %s980_s17 }
 0x1a7   : > { %542 = vrot.lane.b32.xlu1 %v535_v46, %s980_s17 }
 0x215   : > { %v545_v47 = vpop.permute.xlu0 %544  ;;  %v541_v48 = vpop.permute.xlu1 %540 }
 0x216   : > { %v554_v49 = vsel %vm546_vm11, %v545_v47, 0  ;;  %v1149_v53 = vsel %vm546_vm11, 0, %v541_v48 }
 0x217   : > { %578 = vrot.lane.b32.xlu1 %v554_v49, %s971_s28  ;;  %v560_v50 = vrot.slane %v554_v49, 4  ;;  %v557_v55 = vrot.slane %v1149_v53, 4 }
 0x219   : > { %567 = vrot.lane.b32.xlu0 %v560_v50, %s970_s27  ;;  %v543_v51 = vpop.permute.xlu1 %542 }
 0x21a   : > { %v1142_v52 = vsel %vm546_vm11, %v543_v51, %v545_v47  ;;  %v547_v54 = vsel %vm546_vm11, %v541_v48, %v543_v51 }
 0x21b   : > { %600 = vrot.lane.b32.xlu1 %v554_v49, %s973_s30  ;;  %v558_v56 = vrot.slane %v547_v54, 4  ;;  %v559_v57 = vrot.slane %v1142_v52, 4 }
 0x21d   : > { %576 = vrot.lane.b32.xlu0 %v1142_v52, %s971_s28 }
 0x21f   : > { %622 = vrot.lane.b32.xlu1 %v554_v49, %s975_s8 }
 0x221   : > { %589 = vrot.lane.b32.xlu0 %v560_v50, %s972_s29 }
 0x223   : > { %572 = vrot.lane.b32.xlu1 %v1149_v53, %s971_s28 }
 0x225   : > { %598 = vrot.lane.b32.xlu0 %v1142_v52, %s973_s30 }
 0x227   : > { %594 = vrot.lane.b32.xlu1 %v1149_v53, %s973_s30 }
 0x229   : > { %611 = vrot.lane.b32.xlu0 %v560_v50, %s974_s7 }
 0x22b   : > { %616 = vrot.lane.b32.xlu1 %v1149_v53, %s975_s8 }
 0x22d   : > { %620 = vrot.lane.b32.xlu0 %v1142_v52, %s975_s8 }
 0x22f   : > { %574 = vrot.lane.b32.xlu1 %v547_v54, %s971_s28 }
 0x231   : > { %633 = vrot.lane.b32.xlu0 %v560_v50, %s976_s9 }
 0x233   : > { %596 = vrot.lane.b32.xlu1 %v547_v54, %s973_s30 }
 0x235   : > { %583 = vrot.lane.b32.xlu0 %v557_v55, %s972_s29 }
 0x237   : > { %618 = vrot.lane.b32.xlu1 %v547_v54, %s975_s8 }
 0x239   : > { %605 = vrot.lane.b32.xlu0 %v557_v55, %s974_s7 }
 0x23b   : > { %561 = vrot.lane.b32.xlu1 %v557_v55, %s970_s27 }
 0x23d   : > { %627 = vrot.lane.b32.xlu0 %v557_v55, %s976_s9 }
 0x23f   : > { %563 = vrot.lane.b32.xlu1 %v558_v56, %s970_s27 }
 0x241   : > { %565 = vrot.lane.b32.xlu0 %v559_v57, %s970_s27  ;;  %s251_s27 = scalar_lea.vmem %s1253_s6, %s934_s24 }
 0x243   : > { %585 = vrot.lane.b32.xlu1 %v558_v56, %s972_s29 }
 0x245   : > { %587 = vrot.lane.b32.xlu0 %v559_v57, %s972_s29 }
 0x247   : > { %607 = vrot.lane.b32.xlu1 %v558_v56, %s974_s7 }
 0x249   : > { %609 = vrot.lane.b32.xlu0 %v559_v57, %s974_s7 }
 0x24b   : > { %629 = vrot.lane.b32.xlu1 %v558_v56, %s976_s9 }
 0x24d   : > { %631 = vrot.lane.b32.xlu0 %v559_v57, %s976_s9 }
 0x24f   : > { %638 = vrot.lane.b32.xlu1 %v1149_v53, %s979_s10 }
 0x251   : > { %640 = vrot.lane.b32.xlu0 %v547_v54, %s979_s10 }
 0x253   : > { %642 = vrot.lane.b32.xlu1 %v1142_v52, %s979_s10 }
 0x255   : > { %644 = vrot.lane.b32.xlu0 %v554_v49, %s979_s10 }
 0x257   : > { %700 = vperm.xlu1 %956, %v697_v58  }
 0x289   : > { %v579_v59 = vpop.permute.xlu1 %578 }
 0x28b   : > { %v568_v60 = vpop.permute.xlu0 %567 }
 0x28d   : > { %v601_v61 = vpop.permute.xlu1 %600 }
 0x28f   : > { %v577_v62 = vpop.permute.xlu0 %576 }
 0x290   : > { %v582_v28 = vsel %vm285_vm3, %v577_v62, %v579_v59 }
 0x291   : > { %v623_v63 = vpop.permute.xlu1 %622 }
 0x293   : > { %v590_v1 = vpop.permute.xlu0 %589 }
 0x295   : > { %v573_v2 = vpop.permute.xlu1 %572 }
 0x297   : > { %v599_v3 = vpop.permute.xlu0 %598 }
 0x298   : > { %v604_v38 = vsel %vm309_vm5, %v599_v3, %v601_v61 }
 0x299   : > { %v595_v4 = vpop.permute.xlu1 %594 }
 0x29b   : > { %v612_v5 = vpop.permute.xlu0 %611 }
 0x29d   : > { %v617_v6 = vpop.permute.xlu1 %616 }
 0x29f   : > { %v621_v8 = vpop.permute.xlu0 %620 }
 0x2a0   : > { %v626_v49 = vsel %vm333_vm7, %v621_v8, %v623_v63 }
 0x2a1   : > { %v575_v9 = vpop.permute.xlu1 %574 }
 0x2a2   : > { %v581_v29 = vsel %vm285_vm3, %v575_v9, %v577_v62  ;;  %v580_v31 = vsel %vm285_vm3, %v573_v2, %v575_v9  ;;  %v696_v2 = vld [vmem:[%s1250_s3] sm:$0xf] }
 0x2a3   : > { %v634_v10 = vpop.permute.xlu0 %633 }
 0x2a5   : > { %v597_v11 = vpop.permute.xlu1 %596 }
 0x2a6   : > { %v603_v39 = vsel %vm309_vm5, %v597_v11, %v599_v3  ;;  %v602_v42 = vsel %vm309_vm5, %v595_v4, %v597_v11 }
 0x2a7   : > { %v584_v12 = vpop.permute.xlu0 %583 }
 0x2a9   : > { %v619_v13 = vpop.permute.xlu1 %618 }
 0x2aa   : > { %v625_v50 = vsel %vm333_vm7, %v619_v13, %v621_v8 }
 0x2ab   : > { %v606_v14 = vpop.permute.xlu0 %605 }
 0x2ad   : > { %v562_v15 = vpop.permute.xlu1 %561 }
 0x2af   : > { %v628_v16 = vpop.permute.xlu0 %627 }
 0x2b1   : > { %v564_v17 = vpop.permute.xlu1 %563 }
 0x2b2   : > { %v569_v18 = vsel %vm273_vm1, %v562_v15, %v564_v17 }
 0x2b3   : > { %v566_v19 = vpop.permute.xlu0 %565  ;;  %v650_v25 = vsel %vm361_vm2, %v1149_v53, %v569_v18  ;;  %v624_v53 = vsel %vm333_vm7, %v617_v6, %v619_v13 }
 0x2b4   : > { %v570_v20 = vsel %vm273_vm1, %v564_v17, %v566_v19  ;;  %v571_v21 = vsel %vm273_vm1, %v566_v19, %v568_v60 }
 0x2b5   : > { %v586_v22 = vpop.permute.xlu1 %585  ;;  %v654_v23 = vsel %vm361_vm2, %v547_v54, %v570_v20  ;;  %v658_v24 = vsel %vm361_vm2, %v1142_v52, %v571_v21 }
 0x2b6   : > { %715 = vmatprep.subr.bf16.mxu0 %v654_v23  ;;  %921 = vmatpush3.bf16.msra.mxu1 %v658_v24  ;;  %v591_v26 = vsel %vm297_vm4, %v584_v12, %v586_v22 }
 0x2b7   : > { %v588_v27 = vpop.permute.xlu0 %587  ;;  %716 = vmatpush1.bf16.msra.mxu0 %v650_v25  ;;  %922 = vmatprep.subr.bf16.mxu1 %v969_v0  ;;  %v662_v35 = vsel %vm361_vm2, %v580_v31, %v591_v26 }
 0x2b8   : > { %v592_v30 = vsel %vm297_vm4, %v586_v22, %v588_v27  ;;  %v593_v7 = vsel %vm297_vm4, %v588_v27, %v590_v1 }
 0x2b9   : > { %v608_v32 = vpop.permute.xlu1 %607  ;;  %v666_v33 = vsel %vm361_vm2, %v581_v29, %v592_v30  ;;  %v670_v34 = vsel %vm361_vm2, %v582_v28, %v593_v7 }
 0x2ba   : > { %717 = vmatprep.subr.bf16.mxu0 %v666_v33  ;;  %923 = vmatpush3.bf16.msra.mxu1 %v670_v34  ;;  %v613_v36 = vsel %vm321_vm6, %v606_v14, %v608_v32 }
 0x2bb   : > { %v610_v37 = vpop.permute.xlu0 %609  ;;  %718 = vmatpush1.bf16.msra.mxu0 %v662_v35  ;;  %924 = vmatprep.subr.bf16.mxu1 %v969_v0  ;;  %v674_v46 = vsel %vm361_vm2, %v602_v42, %v613_v36 }
 0x2bc   : > { %v614_v40 = vsel %vm321_vm6, %v608_v32, %v610_v37  ;;  %v615_v41 = vsel %vm321_vm6, %v610_v37, %v612_v5 }
 0x2bd   : > { %v630_v43 = vpop.permute.xlu1 %629  ;;  %v678_v44 = vsel %vm361_vm2, %v603_v39, %v614_v40  ;;  %v682_v45 = vsel %vm361_vm2, %v604_v38, %v615_v41 }
 0x2be   : > { %719 = vmatprep.subr.bf16.mxu0 %v678_v44  ;;  %925 = vmatpush3.bf16.msra.mxu1 %v682_v45  ;;  %v635_v47 = vsel %vm345_vm8, %v628_v16, %v630_v43 }
 0x2bf   : > { %v632_v48 = vpop.permute.xlu0 %631  ;;  %720 = vmatpush1.bf16.msra.mxu0 %v674_v46  ;;  %926 = vmatprep.subr.bf16.mxu1 %v969_v0  ;;  %v686_v57 = vsel %vm361_vm2, %v624_v53, %v635_v47 }
 0x2c0   : > { %v636_v51 = vsel %vm345_vm8, %v630_v43, %v632_v48  ;;  %v637_v52 = vsel %vm345_vm8, %v632_v48, %v634_v10 }
 0x2c1   : > { %v639_v54 = vpop.permute.xlu1 %638  ;;  %v690_v55 = vsel %vm361_vm2, %v625_v50, %v636_v51  ;;  %v694_v56 = vsel %vm361_vm2, %v626_v49, %v637_v52 }
 0x2c2   : > { %721 = vmatprep.subr.bf16.mxu0 %v690_v55  ;;  %927 = vmatpush3.bf16.msra.mxu1 %v694_v56 }
 0x2c3   : > { %v641_v58 = vpop.permute.xlu0 %640  ;;  %722 = vmatpush1.bf16.msra.mxu0 %v686_v57  ;;  %928 = vmatprep.subr.bf16.mxu1 %v969_v0 }
 0x2c4   : > { %v646_v59 = vsel %vm357_vm9, %v639_v54, %v641_v58 }
 0x2c5   : > { %v643_v60 = vpop.permute.xlu1 %642  ;;  %v707_v62 = vsel %vm361_vm2, %v646_v59, 0 }
 0x2c6   : > { %v647_v61 = vsel %vm357_vm9, %v641_v58, %v643_v60 }
 0x2c7   : > { %v645_v63 = vpop.permute.xlu0 %644  ;;  %884 = vmatprep.subr.msk.bf16.mxu0 %vm361_vm2, %v647_v61 }
 0x2c8   : > { %v648_v1 = vsel %vm357_vm9, %v643_v60, %v645_v63  ;;  %724 = vmatpush1.bf16.msra.mxu0 %v707_v62 }
 0x2c9   : > { %v713_v0 = vsel %vm361_vm2, %v648_v1, 0 }
 0x2ca   : > { %929 = vmatpush3.bf16.msra.mxu1 %v713_v0 }
 0x2cb   : > { %885 = vmatmul.mubr.msk.bf16.vlgmr.msra.gmra.mrb[4].mxu0 %vm417_vm10, %v696_v2 }
 0x2cd   : > { %931 = vmatmul.mubr.msk.bf16.vlgmr.msra.gmra.mrb[4].mxu1 %vm417_vm10, %v696_v2 }
 0x2d6   : > { %v701_v3 = vpop.permute.xlu1 %700 }
 0x39e   : > { %v749_v4 = vpop.f32.mrb[4].mxu0 }
 0x39f   : > { %v751_v5 = vpop.f32.mrb[5].mxu0  ;;  %v750_v6 = vadd.f32 %v749_v4, %v701_v3 }
 0x3a0   : > { %v752_v8 = vadd.f32 %v751_v5, %v701_v3  ;;  %v753_v9 = vpop.f32.mrb[6].mxu0  ;;  %v790_v10 = vpop.f32.mrb[4].mxu1 }
 0x3a1   : > { %v796_v11 = vmax.f32 %v750_v6, 0.0  ;;  %v791_v12 = vadd.f32 %v790_v10, %v701_v3  ;;  %v754_v13 = vpop.f32.mrb[7].mxu0  ;;  %v932_v14 = vpop.f32.mrb[5].mxu1 }
 0x3a2   : > { %v797_v15 = vmax.f32 %v752_v8, 0.0  ;;  %v793_v16 = vpop.f32.mrb[6].mxu1 }
 0x3a3   : > { %v798_v17 = vmax.f32 %v791_v12, 0.0  ;;  %v933_v18 = vpop.f32.mrb[7].mxu1 }
 0x3a4   : > { %v892_v19 = vpack.c.bf16 %v797_v15, %v796_v11 }
 0x3a5   : > { %v893_v20 = vpack.c.bf16 %v798_v17, %v798_v17 }
 0x3a6   : > { %812 = vst [vmem:[%s251_s27] sm:$0xff] %v892_v19 }
 0x3a7   : > { %813 = vst [vmem:[%s251_s27 + $0x8] sm:$0xf] %v893_v20 }
 0x3a8 PF: > { %s16_s21 = sadd.s32 1, %s967_s21  }
 0x3a9   : > { %p13_p4 = scmp.ge.s32.totalorder %s16_s21, 4  }
 0x3ab   :  { %15 = sbr.rel (!%p13_p4) target bundleno = 1 (0x1), region = 74 }

// kernel: _forward_impl.6
= control target key start
LH: loop header
LB: loop body
LE: loop exit
PB: predicated region body
PF: predicated region fallthrough
CT: control target
= control target key end

     0   :  { %s486_s12 = smov 0   ;;  %s530_s0 = inlined_call_operand.vmem [shape: bf16[2,8,176], index: 0, kind: input, shape index: {}]   ;;  %s531_s1 = inlined_call_operand.vmem [shape: bf16[16,72], index: 1, kind: input, shape index: {}]   ;;  %s532_s2 = inlined_call_operand.vmem [shape: f32[16,1], index: 2, kind: input, shape index: {}]   ;;  %s533_s3 = inlined_call_operand.vmem [shape: bf16[2,16,128], index: 3, kind: output, shape index: {}]  }
   0x1 LB: > { %s377_s13 = sadd.s32 4294967295, %s453_s12   ;;  %p381_p0 = scmp.ge.s32.totalorder %s453_s12, 1  ;;  %s453_s12 = sphi %s486_s12, %s13_s12  }
   0x2   : > { %p137_p1 = scmp.lt.s32.totalorder %s453_s12, 3 }
   0x4   : > { %p138_p2 = pnand %p381_p0, %p137_p1 }
   0x5   : > { %p161_p3 = scmp.lt.s32.totalorder (!%p138_p2), %s377_s13, 1  ;;  %v455_v0 = vmov (!%p138_p2), 0.0   ;;  %s456_s18 = smov (!%p138_p2), 126   ;;  %vm461_vm0 = vmmov (!%p138_p2), 0   ;;  %v463_v4 = vmov (!%p138_p2), 0   ;;  %v245_v5 = vld [vmem:[%s532_s2] sm:$0xff] (!%p138_p2) }
   0x6   : > { %141 = sbr.rel (%p138_p2) target bundleno = 388 (0x184), region = 32  ;;  %409 = vmatprep.subr.bf16.mxu0 (!%p138_p2), %v455_v0  ;;  %s457_s19 = smov (!%p138_p2), 127   ;;  %419 = vmatprep.mubr.msk.bf16.mxu0 (!%p138_p2), %vm461_vm0, %v455_v0  ;;  %v246_v6 = vld [vmem:[%s532_s2 + $0x8] sm:$0xff] (!%p138_p2)  ;;  %vm182_vm1 = vcmask (!%p138_p2), 1039360   ;;  %vm226_vm2 = vcmask (!%p138_p2), 1043456   ;;  %vm188_vm3 = vcmask (!%p138_p2), 1031168  }
   0x7   : > { %s458_s20 = smov (!%p138_p2), 112   ;;  %s459_s21 = smov (!%p138_p2), 111   ;;  %442 = vset.pattern.permute.xlu0 (!%p138_p2), %v463_v4  ;;  %443 = vset.pattern.permute.xlu1 (!%p138_p2), %v463_v4  ;;  %vm194_vm4 = vcmask (!%p138_p2), 916480   ;;  %vm200_vm5 = vcmask (!%p138_p2), 908288   ;;  %vm206_vm6 = vcmask (!%p138_p2), 900096   ;;  %vm212_vm7 = vcmask (!%p138_p2), 785408  }
   0x8   : > { %s460_s22 = smov (!%p138_p2), 110   ;;  %s462_s23 = smov (!%p138_p2), 96   ;;  %vm218_vm8 = vcmask (!%p138_p2), 777216   ;;  %vm224_vm9 = vcmask (!%p138_p2), 769024   ;;  %v446_v36 = vld [vmem:[%s531_s1] sm:$0xff] (!%p138_p2)   ;;  %vm262_vm10 = vcmask (!%p138_p2), 588800  }
   0x9   : > { %s464_s24 = smov (!%p138_p2), 95   ;;  %s465_s25 = smov (!%p138_p2), 94  }
   0xd   : > { %s535_s13 = smov (!%p161_p3, %s377_s13), 1 }
   0xe   : > { %s394_s14 = sshll.u32 %s535_s13, 3 }
   0xf   : > { %s165_s17 = scalar_lea.vmem %s530_s0, %s394_s14  ;;  %s170_s7 = scalar_lea.vmem %s533_s3, %s394_s14 }
  0x10   : > { %v172_v1 = vld [vmem:[%s165_s17] sm:$0xff] }
  0x11   : > { %v386_v2 = vcombine.low %v172_v1, %v172_v1  ;;  %v387_v3 = vcombine.high %v172_v1, %v172_v1 }
  0x13   : > { %184 = vrot.lane.b32.xlu1 %v386_v2, %s456_s18  ;;  %178 = vrot.lane.b32.xlu0 %v386_v2, %s457_s19 }
  0x17   : > { %186 = vrot.lane.b32.xlu1 %v387_v3, %s456_s18  ;;  %180 = vrot.lane.b32.xlu0 %v387_v3, %s457_s19 }
  0x1b   : > { %192 = vrot.lane.b32.xlu1 %v387_v3, %s458_s20  ;;  %190 = vrot.lane.b32.xlu0 %v386_v2, %s458_s20 }
  0x1f   : > { %198 = vrot.lane.b32.xlu1 %v387_v3, %s459_s21  ;;  %196 = vrot.lane.b32.xlu0 %v386_v2, %s459_s21 }
  0x23   : > { %204 = vrot.lane.b32.xlu1 %v387_v3, %s460_s22  ;;  %202 = vrot.lane.b32.xlu0 %v386_v2, %s460_s22 }
  0x27   : > { %210 = vrot.lane.b32.xlu1 %v387_v3, %s462_s23  ;;  %208 = vrot.lane.b32.xlu0 %v386_v2, %s462_s23 }
  0x2b   : > { %216 = vrot.lane.b32.xlu1 %v387_v3, %s464_s24  ;;  %214 = vrot.lane.b32.xlu0 %v386_v2, %s464_s24 }
  0x2f   : > { %222 = vrot.lane.b32.xlu1 %v387_v3, %s465_s25  ;;  %220 = vrot.lane.b32.xlu0 %v386_v2, %s465_s25 }
  0x33   : > { %249 = vperm.xlu0 %442, %v245_v5   ;;  %254 = vperm.xlu1 %443, %v246_v6  }
  0x85   : > { %v185_v7 = vpop.permute.xlu1 %184  ;;  %v179_v8 = vpop.permute.xlu0 %178 }
  0x89   : > { %v187_v9 = vpop.permute.xlu1 %186  ;;  %v181_v10 = vpop.permute.xlu0 %180 }
  0x8a   : > { %v183_v11 = vsel %vm182_vm1, %v179_v8, %v181_v10  ;;  %v189_v15 = vsel %vm188_vm3, %v185_v7, %v187_v9 }
  0x8b   : > { %v229_v12 = vsel %vm226_vm2, %v172_v1, %v183_v11 }
  0x8c   : > { %410 = vmatpush3.bf16.msra.mxu0 %v229_v12 }
  0x8d   : > { %v193_v13 = vpop.permute.xlu1 %192  ;;  %v191_v14 = vpop.permute.xlu0 %190  ;;  %411 = vmatprep.subr.bf16.mxu0 %v455_v0 }
  0x8e   : > { %v195_v16 = vsel %vm194_vm4, %v191_v14, %v193_v13 }
  0x8f   : > { %v233_v17 = vsel %vm226_vm2, %v189_v15, %v195_v16 }
  0x90   : > { %412 = vmatpush3.bf16.msra.mxu0 %v233_v17 }
  0x91   : > { %v199_v18 = vpop.permute.xlu1 %198  ;;  %v197_v19 = vpop.permute.xlu0 %196  ;;  %413 = vmatprep.subr.bf16.mxu0 %v455_v0 }
  0x92   : > { %v201_v22 = vsel %vm200_vm5, %v197_v19, %v199_v18 }
  0x95   : > { %v205_v20 = vpop.permute.xlu1 %204  ;;  %v203_v21 = vpop.permute.xlu0 %202 }
  0x96   : > { %v207_v23 = vsel %vm206_vm6, %v203_v21, %v205_v20 }
  0x97   : > { %v237_v24 = vsel %vm226_vm2, %v201_v22, %v207_v23 }
  0x98   : > { %414 = vmatpush3.bf16.msra.mxu0 %v237_v24 }
  0x99   : > { %v211_v25 = vpop.permute.xlu1 %210  ;;  %v209_v26 = vpop.permute.xlu0 %208  ;;  %415 = vmatprep.subr.bf16.mxu0 %v455_v0 }
  0x9a   : > { %v213_v29 = vsel %vm212_vm7, %v209_v26, %v211_v25 }
  0x9d   : > { %v217_v27 = vpop.permute.xlu1 %216  ;;  %v215_v28 = vpop.permute.xlu0 %214 }
  0x9e   : > { %v219_v30 = vsel %vm218_vm8, %v215_v28, %v217_v27 }
  0x9f   : > { %v241_v31 = vsel %vm226_vm2, %v213_v29, %v219_v30 }
  0xa0   : > { %416 = vmatpush3.bf16.msra.mxu0 %v241_v31 }
  0xa1   : > { %v223_v32 = vpop.permute.xlu1 %222  ;;  %v221_v33 = vpop.permute.xlu0 %220  ;;  %417 = vmatprep.subr.bf16.mxu0 %v455_v0 }
  0xa2   : > { %v225_v34 = vsel %vm224_vm9, %v221_v33, %v223_v32 }
  0xa3   : > { %v267_v35 = vsel %vm226_vm2, %v225_v34, 0 }
  0xa4   : > { %418 = vmatpush3.bf16.msra.mxu0 %v267_v35 }
  0xa7   : > { %420 = vmatmul.mubr.msk.bf16.vlgmr.msra.gmra.mrb[0].mxu0 %vm262_vm10, %v446_v36 }
  0xb2   : > { %v250_v37 = vpop.permute.xlu0 %249  ;;  %v255_v39 = vpop.permute.xlu1 %254 }
 0x17a   : > { %v303_v38 = vpop.f32.mrb[0].mxu0 }
 0x17b   : > { %v304_v40 = vadd.f32 %v303_v38, %v250_v37  ;;  %v421_v41 = vpop.f32.mrb[1].mxu0 }
 0x17c   : > { %v306_v42 = vpop.f32.mrb[2].mxu0 }
 0x17d   : > { %v307_v43 = vadd.f32 %v306_v42, %v255_v39  ;;  %v422_v44 = vpop.f32.mrb[3].mxu0  ;;  %v310_v45 = vmax.f32 %v304_v40, 0.0 }
 0x17f   : > { %v311_v46 = vmax.f32 %v307_v43, 0.0 }
 0x181   : > { %v401_v47 = vpack.c.bf16 %v311_v46, %v310_v45 }
 0x183   : > { %402 = vst [vmem:[%s170_s7] sm:$0xff] %v401_v47  }
 0x184 PF: > { %s13_s12 = sadd.s32 1, %s453_s12  }
 0x185   : > { %p10_p4 = scmp.ge.s32.totalorder %s13_s12, 4  }
 0x187   :  { %12 = sbr.rel (!%p10_p4) target bundleno = 1 (0x1), region = 62 }

// kernel: _forward_impl.7
= control target key start
LH: loop header
LB: loop body
LE: loop exit
PB: predicated region body
PF: predicated region fallthrough
CT: control target
= control target key end

     0   :  { %s976_s20 = smov 0   ;;  %s1187_s0 = inlined_call_operand.vmem [shape: bf16[2,24,456], index: 0, kind: input, shape index: {}]   ;;  %s1188_s1 = inlined_call_operand.vmem [shape: bf16[8,216], index: 1, kind: input, shape index: {}]   ;;  %s1189_s2 = inlined_call_operand.vmem [shape: f32[8,1], index: 2, kind: input, shape index: {}]   ;;  %s1190_s3 = inlined_call_operand.vmem [shape: bf16[1,8], index: 3, kind: input, shape index: {}]   ;;  %s1191_s4 = inlined_call_operand.<no memory space> [shape: f32[1,1], index: 4, kind: input, shape index: {}]   ;;  %s1192_s5 = inlined_call_operand.vmem [shape: f32[2,1,384], index: 5, kind: output, shape index: {}]  }
   0x1   :  { %v10_v0 = vstv %s1191_s4 }
   0x2   :  { %11 = vst [vmem:[#allocation2] sm:$0x1] %v10_v0 }
   0x3 LB: > { %s838_s21 = sadd.s32 4294967295, %s929_s20   ;;  %p842_p0 = scmp.ge.s32.totalorder %s929_s20, 1  ;;  %s929_s20 = sphi %s976_s20, %s17_s20  }
   0x4   : > { %p189_p1 = scmp.lt.s32.totalorder %s929_s20, 3 }
   0x6   : > { %p190_p2 = pnand %p842_p0, %p189_p1 }
   0x7   : > { %p216_p3 = scmp.lt.s32.totalorder (!%p190_p2), %s838_s21, 1  ;;  %v931_v1 = vmov (!%p190_p2), 0   ;;  %s932_s25 = smov (!%p190_p2), 127   ;;  %v1072_v24 = vld [vmem:[%s1188_s1] sm:$0xff] (!%p190_p2)  ;;  %vm539_vm0 = vcmask (!%p190_p2), 719872   ;;  %vm283_vm1 = vcmask (!%p190_p2), 1039360  }
   0x8   : > { %193 = sbr.rel (%p190_p2) target bundleno = 714 (0x2ca), region = 40  ;;  %593 = vmatprep.subr.bf16.mxu1 (!%p190_p2), %v931_v1  ;;  %903 = vset.pattern.permute.xlu0 (!%p190_p2), %v931_v1  ;;  %s933_s26 = smov (!%p190_p2), 126   ;;  %v861_v25 = vcombine.high (!%p190_p2), %v1072_v24, %v1072_v24  ;;  %vm477_vm2 = vcmask (!%p190_p2), 1043456   ;;  %v527_v39 = vld [vmem:[%s1189_s2] sm:$0xff] (!%p190_p2)  ;;  %vm311_vm3 = vcmask (!%p190_p2), 1031168   ;;  %vm337_vm4 = vcmask (!%p190_p2), 850944  }
   0x9   : > { %904 = vset.pattern.permute.xlu1 (!%p190_p2), %v931_v1  ;;  %s934_s27 = smov (!%p190_p2), 104   ;;  %s935_s28 = smov (!%p190_p2), 103   ;;  %vm363_vm5 = vcmask (!%p190_p2), 842752   ;;  %vm389_vm6 = vcmask (!%p190_p2), 834560   ;;  %vm415_vm7 = vcmask (!%p190_p2), 654336   ;;  %vm441_vm8 = vcmask (!%p190_p2), 646144  }
   0xa   : > { %s936_s29 = smov (!%p190_p2), 102   ;;  %s937_s30 = smov (!%p190_p2), 80   ;;  %863 = vmatprep.mubr.msk.bf16.mxu0 (!%p190_p2), %vm539_vm0, %v861_v25  ;;  %864 = vmatprep.mubr.msk.bf16.mxu1 (!%p190_p2), %vm539_vm0, %v861_v25  ;;  %vm467_vm9 = vcmask (!%p190_p2), 637952   ;;  %vm941_vm10 = vmmov (!%p190_p2), 0   ;;  %vm650_vm11 = vcmask (!%p190_p2), 64512  }
   0xb   : > { %s938_s6 = smov (!%p190_p2), 79   ;;  %s939_s7 = smov (!%p190_p2), 78  }
   0xf   : > { %s1194_s21 = smov (!%p216_p3, %s838_s21), 1 }
  0x10   : > { %s881_s4 = smul.u32 48, %s1194_s21 }
  0x11   : > { %s882_s14 = smul.u32 3, %s1194_s21 }
  0x12   : > { %s220_s24 = scalar_lea.vmem %s1187_s0, %s881_s4 }
  0x13   : > { %v226_v2 = vld [vmem:[%s220_s24] sm:$0xff]  ;;  %v227_v3 = vld [vmem:[%s220_s24 + $0x8] sm:$0xff]  ;;  %v228_v6 = vld [vmem:[%s220_s24 + $0x10] sm:$0xff]  ;;  %s224_s17 = scalar_lea.vmem %s1192_s5, %s882_s14 }
  0x14   : > { %v993_v4 = vcombine.high %v226_v2, %v226_v2  ;;  %v995_v5 = vcombine.low %v226_v2, %v226_v2  ;;  %v229_v7 = vld [vmem:[%s220_s24 + $0x18] sm:$0xff]  ;;  %v997_v8 = vcombine.high %v226_v2, %v228_v6  ;;  %v1001_v9 = vcombine.low %v227_v3, %v227_v3  ;;  %v230_v12 = vld [vmem:[%s220_s24 + $0x20] sm:$0xff]  ;;  %v231_v13 = vld [vmem:[%s220_s24 + $0x28] sm:$0xff] }
  0x15   : > { %v1003_v10 = vcombine.high %v227_v3, %v227_v3  ;;  %v1005_v11 = vcombine.low %v227_v3, %v229_v7  ;;  %v1007_v14 = vcombine.low %v226_v2, %v228_v6  ;;  %v1015_v15 = vcombine.high %v228_v6, %v230_v12 }
  0x16   : > { %269 = vrot.lane.b32.xlu0 %v993_v4, %s932_s25  ;;  %267 = vrot.lane.b32.xlu1 %v995_v5, %s932_s25  ;;  %v856_v16 = vcombine.low %v229_v7, %v231_v13  ;;  %v854_v17 = vcombine.low %v228_v6, %v230_v12  ;;  %v857_v18 = vcombine.high %v229_v7, %v231_v13 }
  0x17   : > { %552 = vmatprep.subr.bf16.mxu0 %v997_v8  ;;  %594 = vmatpush1.bf16.msra.mxu1 %v1005_v11  ;;  %v1020_v19 = vcombine.high %v230_v12, %v230_v12  ;;  %v1024_v20 = vcombine.low %v231_v13, %v231_v13  ;;  %v1028_v21 = vcombine.low %v230_v12, %v230_v12 }
  0x18   : > { %553 = vmatpush1.bf16.msra.mxu0 %v1007_v14  ;;  %595 = vmatprep.subr.bf16.mxu1 %v931_v1  ;;  %v1032_v22 = vcombine.high %v227_v3, %v229_v7  ;;  %v1036_v23 = vcombine.high %v231_v13, %v231_v13 }
  0x1a   : > { %271 = vrot.lane.b32.xlu0 %v1001_v9, %s932_s25  ;;  %273 = vrot.lane.b32.xlu1 %v1003_v10, %s932_s25 }
  0x1e   : > { %277 = vrot.lane.b32.xlu0 %v1015_v15, %s932_s25  ;;  %279 = vrot.lane.b32.xlu1 %v856_v16, %s932_s25 }
  0x22   : > { %275 = vrot.lane.b32.xlu0 %v854_v17, %s932_s25  ;;  %297 = vrot.lane.b32.xlu1 %v997_v8, %s933_s26 }
  0x26   : > { %299 = vrot.lane.b32.xlu0 %v1005_v11, %s933_s26  ;;  %281 = vrot.lane.b32.xlu1 %v857_v18, %s932_s25 }
  0x2a   : > { %305 = vrot.lane.b32.xlu1 %v1020_v19, %s933_s26  ;;  %295 = vrot.lane.b32.xlu0 %v1007_v14, %s933_s26 }
  0x2e   : > { %323 = vrot.lane.b32.xlu1 %v993_v4, %s934_s27  ;;  %307 = vrot.lane.b32.xlu0 %v1024_v20, %s933_s26 }
  0x32   : > { %303 = vrot.lane.b32.xlu1 %v1028_v21, %s933_s26  ;;  %325 = vrot.lane.b32.xlu0 %v1001_v9, %s934_s27 }
  0x36   : > { %301 = vrot.lane.b32.xlu1 %v1032_v22, %s933_s26  ;;  %321 = vrot.lane.b32.xlu0 %v995_v5, %s934_s27 }
  0x3a   : > { %327 = vrot.lane.b32.xlu1 %v1003_v10, %s934_s27  ;;  %309 = vrot.lane.b32.xlu0 %v1036_v23, %s933_s26 }
  0x3e   : > { %333 = vrot.lane.b32.xlu1 %v856_v16, %s934_s27  ;;  %331 = vrot.lane.b32.xlu0 %v1015_v15, %s934_s27 }
  0x42   : > { %349 = vrot.lane.b32.xlu1 %v997_v8, %s935_s28  ;;  %329 = vrot.lane.b32.xlu0 %v854_v17, %s934_s27 }
  0x46   : > { %335 = vrot.lane.b32.xlu1 %v857_v18, %s934_s27  ;;  %351 = vrot.lane.b32.xlu0 %v1005_v11, %s935_s28 }
  0x4a   : > { %357 = vrot.lane.b32.xlu1 %v1020_v19, %s935_s28  ;;  %347 = vrot.lane.b32.xlu0 %v1007_v14, %s935_s28 }
  0x4e   : > { %375 = vrot.lane.b32.xlu1 %v993_v4, %s936_s29  ;;  %359 = vrot.lane.b32.xlu0 %v1024_v20, %s935_s28 }
  0x52   : > { %355 = vrot.lane.b32.xlu1 %v1028_v21, %s935_s28  ;;  %377 = vrot.lane.b32.xlu0 %v1001_v9, %s936_s29 }
  0x56   : > { %353 = vrot.lane.b32.xlu1 %v1032_v22, %s935_s28  ;;  %373 = vrot.lane.b32.xlu0 %v995_v5, %s936_s29 }
  0x5a   : > { %379 = vrot.lane.b32.xlu1 %v1003_v10, %s936_s29  ;;  %361 = vrot.lane.b32.xlu0 %v1036_v23, %s935_s28 }
  0x5e   : > { %385 = vrot.lane.b32.xlu1 %v856_v16, %s936_s29  ;;  %383 = vrot.lane.b32.xlu0 %v1015_v15, %s936_s29 }
  0x62   : > { %401 = vrot.lane.b32.xlu1 %v997_v8, %s937_s30  ;;  %381 = vrot.lane.b32.xlu0 %v854_v17, %s936_s29 }
  0x66   : > { %387 = vrot.lane.b32.xlu1 %v857_v18, %s936_s29  ;;  %403 = vrot.lane.b32.xlu0 %v1005_v11, %s937_s30 }
  0x6a   : > { %409 = vrot.lane.b32.xlu1 %v1020_v19, %s937_s30  ;;  %399 = vrot.lane.b32.xlu0 %v1007_v14, %s937_s30 }
  0x6e   : > { %427 = vrot.lane.b32.xlu1 %v993_v4, %s938_s6  ;;  %411 = vrot.lane.b32.xlu0 %v1024_v20, %s937_s30 }
  0x72   : > { %407 = vrot.lane.b32.xlu1 %v1028_v21, %s937_s30  ;;  %429 = vrot.lane.b32.xlu0 %v1001_v9, %s938_s6 }
  0x76   : > { %405 = vrot.lane.b32.xlu1 %v1032_v22, %s937_s30  ;;  %425 = vrot.lane.b32.xlu0 %v995_v5, %s938_s6 }
  0x7a   : > { %431 = vrot.lane.b32.xlu1 %v1003_v10, %s938_s6  ;;  %413 = vrot.lane.b32.xlu0 %v1036_v23, %s937_s30 }
  0x7e   : > { %437 = vrot.lane.b32.xlu1 %v856_v16, %s938_s6  ;;  %435 = vrot.lane.b32.xlu0 %v1015_v15, %s938_s6 }
  0x82   : > { %453 = vrot.lane.b32.xlu1 %v997_v8, %s939_s7  ;;  %433 = vrot.lane.b32.xlu0 %v854_v17, %s938_s6 }
  0x86   : > { %439 = vrot.lane.b32.xlu1 %v857_v18, %s938_s6  ;;  %455 = vrot.lane.b32.xlu0 %v1005_v11, %s939_s7 }
  0x88   : > { %v270_v26 = vpop.permute.xlu0 %269  ;;  %v268_v27 = vpop.permute.xlu1 %267 }
  0x89   : > { %v284_v28 = vsel %vm283_vm1, %v268_v27, %v270_v26 }
  0x8a   : > { %459 = vrot.lane.b32.xlu1 %v1028_v21, %s939_s7  ;;  %451 = vrot.lane.b32.xlu0 %v1007_v14, %s939_s7  ;;  %v480_v35 = vsel %vm477_vm2, %v1028_v21, %v284_v28 }
  0x8c   : > { %v272_v29 = vpop.permute.xlu0 %271  ;;  %v274_v30 = vpop.permute.xlu1 %273 }
  0x8d   : > { %v285_v31 = vsel %vm283_vm1, %v270_v26, %v272_v29  ;;  %v286_v32 = vsel %vm283_vm1, %v272_v29, %v274_v30 }
  0x8e   : > { %463 = vrot.lane.b32.xlu1 %v1024_v20, %s939_s7  ;;  %461 = vrot.lane.b32.xlu0 %v1020_v19, %s939_s7  ;;  %v484_v33 = vsel %vm477_vm2, %v1020_v19, %v285_v31  ;;  %v488_v34 = vsel %vm477_vm2, %v1024_v20, %v286_v32 }
  0x8f   : > { %554 = vmatprep.subr.bf16.mxu0 %v484_v33  ;;  %596 = vmatpush1.bf16.msra.mxu1 %v488_v34 }
  0x90   : > { %v278_v36 = vpop.permute.xlu0 %277  ;;  %v280_v37 = vpop.permute.xlu1 %279  ;;  %555 = vmatpush1.bf16.msra.mxu0 %v480_v35  ;;  %597 = vmatprep.subr.bf16.mxu1 %v931_v1 }
  0x91   : > { %v288_v38 = vsel %vm283_vm1, %v278_v36, %v280_v37 }
  0x92   : > { %465 = vrot.lane.b32.xlu1 %v1036_v23, %s939_s7  ;;  %457 = vrot.lane.b32.xlu0 %v1032_v22, %s939_s7 }
  0x93   : > { %556 = vmatprep.subr.bf16.mxu0 %v288_v38 }
  0x94   : > { %v276_v40 = vpop.permute.xlu0 %275  ;;  %v298_v41 = vpop.permute.xlu1 %297 }
  0x95   : > { %v287_v42 = vsel %vm283_vm1, %v276_v40, %v278_v36 }
  0x96   : > { %557 = vmatpush1.bf16.msra.mxu0 %v287_v42  ;;  %530 = vperm.xlu0 %903, %v527_v39  }
  0x98   : > { %v300_v43 = vpop.permute.xlu0 %299  ;;  %v282_v44 = vpop.permute.xlu1 %281 }
  0x99   : > { %v313_v45 = vsel %vm311_vm3, %v298_v41, %v300_v43  ;;  %v289_v46 = vsel %vm283_vm1, %v280_v37, %v282_v44 }
  0x9a   : > { %558 = vmatprep.subr.bf16.mxu0 %v313_v45  ;;  %598 = vmatpush1.bf16.msra.mxu1 %v289_v46 }
  0x9b   : > { %599 = vmatprep.subr.bf16.mxu1 %v931_v1 }
  0x9c   : > { %v306_v47 = vpop.permute.xlu1 %305  ;;  %v296_v48 = vpop.permute.xlu0 %295 }
  0x9d   : > { %v312_v49 = vsel %vm311_vm3, %v296_v48, %v298_v41 }
  0x9e   : > { %559 = vmatpush1.bf16.msra.mxu0 %v312_v49 }
  0xa0   : > { %v324_v50 = vpop.permute.xlu1 %323  ;;  %v308_v51 = vpop.permute.xlu0 %307 }
  0xa1   : > { %v316_v54 = vsel %vm311_vm3, %v306_v47, %v308_v51 }
  0xa4   : > { %v304_v52 = vpop.permute.xlu1 %303  ;;  %v326_v53 = vpop.permute.xlu0 %325 }
  0xa5   : > { %v339_v55 = vsel %vm337_vm4, %v324_v50, %v326_v53  ;;  %v315_v59 = vsel %vm311_vm3, %v304_v52, %v306_v47 }
  0xa6   : > { %v496_v56 = vsel %vm477_vm2, %v316_v54, %v339_v55 }
  0xa7   : > { %560 = vmatprep.subr.bf16.mxu0 %v496_v56 }
  0xa8   : > { %v302_v57 = vpop.permute.xlu1 %301  ;;  %v322_v58 = vpop.permute.xlu0 %321 }
  0xa9   : > { %v338_v60 = vsel %vm337_vm4, %v322_v58, %v324_v50  ;;  %v314_v61 = vsel %vm311_vm3, %v300_v43, %v302_v57 }
  0xaa   : > { %600 = vmatpush1.bf16.msra.mxu1 %v314_v61  ;;  %v492_v62 = vsel %vm477_vm2, %v315_v59, %v338_v60 }
  0xab   : > { %561 = vmatpush1.bf16.msra.mxu0 %v492_v62  ;;  %601 = vmatprep.subr.bf16.mxu1 %v931_v1 }
  0xac   : > { %v328_v63 = vpop.permute.xlu1 %327  ;;  %v310_v0 = vpop.permute.xlu0 %309 }
  0xad   : > { %v340_v2 = vsel %vm337_vm4, %v326_v53, %v328_v63  ;;  %v317_v3 = vsel %vm311_vm3, %v308_v51, %v310_v0 }
  0xae   : > { %v500_v4 = vsel %vm477_vm2, %v317_v3, %v340_v2 }
  0xaf   : > { %602 = vmatpush1.bf16.msra.mxu1 %v500_v4 }
  0xb0   : > { %v334_v5 = vpop.permute.xlu1 %333  ;;  %v332_v6 = vpop.permute.xlu0 %331  ;;  %603 = vmatprep.subr.bf16.mxu1 %v931_v1 }
  0xb1   : > { %v342_v7 = vsel %vm337_vm4, %v332_v6, %v334_v5 }
  0xb2   : > { %562 = vmatprep.subr.bf16.mxu0 %v342_v7 }
  0xb4   : > { %v350_v8 = vpop.permute.xlu1 %349  ;;  %v330_v9 = vpop.permute.xlu0 %329 }
  0xb5   : > { %v341_v10 = vsel %vm337_vm4, %v330_v9, %v332_v6 }
  0xb6   : > { %563 = vmatpush1.bf16.msra.mxu0 %v341_v10 }
  0xb8   : > { %v336_v11 = vpop.permute.xlu1 %335  ;;  %v352_v12 = vpop.permute.xlu0 %351 }
  0xb9   : > { %v365_v13 = vsel %vm363_vm5, %v350_v8, %v352_v12  ;;  %v343_v14 = vsel %vm337_vm4, %v334_v5, %v336_v11 }
  0xba   : > { %564 = vmatprep.subr.bf16.mxu0 %v365_v13  ;;  %604 = vmatpush1.bf16.msra.mxu1 %v343_v14 }
  0xbb   : > { %605 = vmatprep.subr.bf16.mxu1 %v931_v1 }
  0xbc   : > { %v358_v15 = vpop.permute.xlu1 %357  ;;  %v348_v16 = vpop.permute.xlu0 %347 }
  0xbd   : > { %v364_v17 = vsel %vm363_vm5, %v348_v16, %v350_v8 }
  0xbe   : > { %565 = vmatpush1.bf16.msra.mxu0 %v364_v17 }
  0xc0   : > { %v376_v18 = vpop.permute.xlu1 %375  ;;  %v360_v19 = vpop.permute.xlu0 %359 }
  0xc1   : > { %v368_v22 = vsel %vm363_vm5, %v358_v15, %v360_v19 }
  0xc4   : > { %v356_v20 = vpop.permute.xlu1 %355  ;;  %v378_v21 = vpop.permute.xlu0 %377 }
  0xc5   : > { %v391_v23 = vsel %vm389_vm6, %v376_v18, %v378_v21  ;;  %v367_v28 = vsel %vm363_vm5, %v356_v20, %v358_v15 }
  0xc6   : > { %v508_v25 = vsel %vm477_vm2, %v368_v22, %v391_v23  ;;  %v860_v23 = vcombine.low %v1072_v24, %v1072_v24  ;;  %v640_v24 = vld [vmem:[#allocation2] sm:$0x1] }
  0xc7   : > { %566 = vmatprep.subr.bf16.mxu0 %v508_v25  ;;  %643 = vperm.xlu1 %904, %v640_v24  }
  0xc8   : > { %v354_v26 = vpop.permute.xlu1 %353  ;;  %v374_v27 = vpop.permute.xlu0 %373 }
  0xc9   : > { %v390_v29 = vsel %vm389_vm6, %v374_v27, %v376_v18  ;;  %v366_v30 = vsel %vm363_vm5, %v352_v12, %v354_v26 }
  0xca   : > { %606 = vmatpush1.bf16.msra.mxu1 %v366_v30  ;;  %v504_v31 = vsel %vm477_vm2, %v367_v28, %v390_v29  ;;  %v940_v30 = vmov 0.0  }
  0xcb   : > { %567 = vmatpush1.bf16.msra.mxu0 %v504_v31  ;;  %607 = vmatprep.subr.bf16.mxu1 %v931_v1 }
  0xcc   : > { %v380_v32 = vpop.permute.xlu1 %379  ;;  %v362_v33 = vpop.permute.xlu0 %361 }
  0xcd   : > { %v392_v34 = vsel %vm389_vm6, %v378_v21, %v380_v32  ;;  %v369_v35 = vsel %vm363_vm5, %v360_v19, %v362_v33 }
  0xce   : > { %v512_v36 = vsel %vm477_vm2, %v369_v35, %v392_v34 }
  0xcf   : > { %608 = vmatpush1.bf16.msra.mxu1 %v512_v36 }
  0xd0   : > { %v386_v37 = vpop.permute.xlu1 %385  ;;  %v384_v38 = vpop.permute.xlu0 %383  ;;  %609 = vmatprep.subr.bf16.mxu1 %v931_v1 }
  0xd1   : > { %v394_v39 = vsel %vm389_vm6, %v384_v38, %v386_v37 }
  0xd2   : > { %568 = vmatprep.subr.bf16.mxu0 %v394_v39 }
  0xd4   : > { %v402_v40 = vpop.permute.xlu1 %401  ;;  %v382_v41 = vpop.permute.xlu0 %381 }
  0xd5   : > { %v393_v42 = vsel %vm389_vm6, %v382_v41, %v384_v38 }
  0xd6   : > { %569 = vmatpush1.bf16.msra.mxu0 %v393_v42 }
  0xd8   : > { %v388_v43 = vpop.permute.xlu1 %387  ;;  %v404_v44 = vpop.permute.xlu0 %403 }
  0xd9   : > { %v417_v45 = vsel %vm415_vm7, %v402_v40, %v404_v44  ;;  %v395_v46 = vsel %vm389_vm6, %v386_v37, %v388_v43 }
  0xda   : > { %570 = vmatprep.subr.bf16.mxu0 %v417_v45  ;;  %610 = vmatpush1.bf16.msra.mxu1 %v395_v46  ;;  %v636_v46 = vld [vmem:[%s1190_s3] sm:$0x1] }
  0xdb   : > { %611 = vmatprep.subr.bf16.mxu1 %v931_v1 }
  0xdc   : > { %v410_v47 = vpop.permute.xlu1 %409  ;;  %v400_v48 = vpop.permute.xlu0 %399 }
  0xdd   : > { %v416_v49 = vsel %vm415_vm7, %v400_v48, %v402_v40 }
  0xde   : > { %571 = vmatpush1.bf16.msra.mxu0 %v416_v49 }
  0xe0   : > { %v428_v50 = vpop.permute.xlu1 %427  ;;  %v412_v51 = vpop.permute.xlu0 %411 }
  0xe1   : > { %v420_v54 = vsel %vm415_vm7, %v410_v47, %v412_v51 }
  0xe4   : > { %v408_v52 = vpop.permute.xlu1 %407  ;;  %v430_v53 = vpop.permute.xlu0 %429 }
  0xe5   : > { %v443_v55 = vsel %vm441_vm8, %v428_v50, %v430_v53  ;;  %v419_v59 = vsel %vm415_vm7, %v408_v52, %v410_v47 }
  0xe6   : > { %v520_v56 = vsel %vm477_vm2, %v420_v54, %v443_v55  ;;  %v942_v55 = vmov 1966171168  }
  0xe7   : > { %572 = vmatprep.subr.bf16.mxu0 %v520_v56  ;;  %v758_v56 = vunpack.c.l.s4 %v942_v55 }
  0xe8   : > { %v406_v57 = vpop.permute.xlu1 %405  ;;  %v426_v58 = vpop.permute.xlu0 %425 }
  0xe9   : > { %v442_v60 = vsel %vm441_vm8, %v426_v58, %v428_v50  ;;  %v418_v61 = vsel %vm415_vm7, %v404_v44, %v406_v57 }
  0xea   : > { %612 = vmatpush1.bf16.msra.mxu1 %v418_v61  ;;  %v516_v62 = vsel %vm477_vm2, %v419_v59, %v442_v60  ;;  %v759_v59 = vunpack.c.0.s8 %v758_v56 }
  0xeb   : > { %573 = vmatpush1.bf16.msra.mxu0 %v516_v62  ;;  %613 = vmatprep.subr.bf16.mxu1 %v931_v1 }
  0xec   : > { %v432_v63 = vpop.permute.xlu1 %431  ;;  %v414_v0 = vpop.permute.xlu0 %413 }
  0xed   : > { %v444_v2 = vsel %vm441_vm8, %v430_v53, %v432_v63  ;;  %v421_v3 = vsel %vm415_vm7, %v412_v51, %v414_v0  ;;  %v646_v51 = vlaneseq }
  0xee   : > { %v524_v4 = vsel %vm477_vm2, %v421_v3, %v444_v2 }
  0xef   : > { %614 = vmatpush1.bf16.msra.mxu1 %v524_v4  ;;  %v647_v52 = vshrl.u32 %v646_v51, 7  ;;  %vm782_vm15 = vcmp.lt.s32.totalorder %v646_v51, 384 }
  0xf0   : > { %v438_v5 = vpop.permute.xlu1 %437  ;;  %v436_v6 = vpop.permute.xlu0 %435  ;;  %615 = vmatprep.subr.bf16.mxu1 %v931_v1 }
  0xf1   : > { %v446_v7 = vsel %vm441_vm8, %v436_v6, %v438_v5  ;;  %v648_v53 = vsub.s32 0, %v647_v52  ;;  %v762_v3 = vsub.s32 %v759_v59, %v647_v52 }
  0xf2   : > { %574 = vmatprep.subr.bf16.mxu0 %v446_v7 }
  0xf4   : > { %v454_v8 = vpop.permute.xlu1 %453  ;;  %v434_v9 = vpop.permute.xlu0 %433 }
  0xf5   : > { %v445_v10 = vsel %vm441_vm8, %v434_v9, %v436_v6 }
  0xf6   : > { %575 = vmatpush1.bf16.msra.mxu0 %v445_v10 }
  0xf8   : > { %v440_v11 = vpop.permute.xlu1 %439  ;;  %v456_v12 = vpop.permute.xlu0 %455 }
  0xf9   : > { %v469_v13 = vsel %vm467_vm9, %v454_v8, %v456_v12  ;;  %v447_v14 = vsel %vm441_vm8, %v438_v5, %v440_v11 }
  0xfa   : > { %576 = vmatprep.subr.bf16.mxu0 %v469_v13  ;;  %616 = vmatpush1.bf16.msra.mxu1 %v447_v14 }
  0xfb   : > { %617 = vmatprep.subr.bf16.mxu1 %v931_v1 }
  0xfc   : > { %v460_v15 = vpop.permute.xlu1 %459  ;;  %v452_v16 = vpop.permute.xlu0 %451 }
  0xfd   : > { %v468_v17 = vsel %vm467_vm9, %v452_v16, %v454_v8 }
  0xfe   : > { %577 = vmatpush1.bf16.msra.mxu0 %v468_v17 }
 0x100   : > { %v464_v18 = vpop.permute.xlu1 %463  ;;  %v462_v19 = vpop.permute.xlu0 %461 }
 0x101   : > { %v471_v20 = vsel %vm467_vm9, %v460_v15, %v462_v19  ;;  %v472_v21 = vsel %vm467_vm9, %v462_v19, %v464_v18 }
 0x102   : > { %862 = vmatprep.subr.msk.bf16.mxu0 %vm477_vm2, %v472_v21  ;;  %v544_v22 = vsel %vm477_vm2, %v471_v20, 0 }
 0x103   : > { %579 = vmatpush1.bf16.msra.mxu0 %v544_v22 }
 0x104   : > { %v466_v25 = vpop.permute.xlu1 %465  ;;  %v458_v26 = vpop.permute.xlu0 %457 }
 0x105   : > { %v470_v27 = vsel %vm467_vm9, %v456_v12, %v458_v26  ;;  %v473_v28 = vsel %vm467_vm9, %v464_v18, %v466_v25 }
 0x106   : > { %585 = vmatmul.mubr.bf16.vlgmr.msra.gmra.mrb[0].mxu0 %v860_v23  ;;  %618 = vmatpush1.bf16.msra.mxu1 %v470_v27  ;;  %v550_v29 = vsel %vm477_vm2, %v473_v28, 0 }
 0x107   : > { %619 = vmatprep.subr.bf16.mxu1 %v931_v1  ;;  %695 = vmatprep.mubr.bf16.mxu0 %v931_v1 }
 0x10a   : > { %620 = vmatpush1.bf16.msra.mxu1 %v550_v29 }
 0x10b   : > { %875 = vmatprep.subr.bf16.mxu1 %v940_v30 }
 0x10d   : > { %626 = vmatmul.mubr.bf16.vlgmr.msra.gmra.mrb[0].mxu1 %v860_v23 }
 0x10e   : > { %877 = vmatprep.mubr.msk.bf16.mxu1 %vm941_vm10, %v940_v30 }
 0x115   : > { %v531_v31 = vpop.permute.xlu0 %530 }
 0x146   : > { %v644_v54 = vpop.permute.xlu1 %643 }
 0x147   : > { %v649_v57 = vrot.slane %v644_v54, %v648_v53 }
 0x1d9   : > { %v586_v32 = vpop.f32.mrb[0].mxu0 }
 0x1da   : > { %v588_v33 = vpop.f32.mrb[1].mxu0  ;;  %v587_v34 = vadd.f32 %v586_v32, %v531_v31 }
 0x1db   : > { %v590_v35 = vpop.f32.mrb[2].mxu0  ;;  %v589_v36 = vadd.f32 %v588_v33, %v531_v31 }
 0x1dc   : > { %v633_v37 = vmax.f32 %v587_v34, 0.0  ;;  %v591_v38 = vpop.f32.mrb[3].mxu0 }
 0x1dd   : > { %v634_v39 = vmax.f32 %v589_v36, 0.0 }
 0x1de   : > { %v637_v1 = vpack.c.bf16 %v633_v37, %v633_v37 }
 0x1df   : > { %v638_v40 = vpack.c.bf16 %v634_v39, %v634_v39 }
 0x1e0   : > { %v627_v41 = vpop.f32.mrb[0].mxu1  ;;  %v655_v42 = vsel %vm477_vm2, %v637_v1, 0 }
 0x1e1   : > { %v628_v43 = vadd.f32 %v627_v41, %v531_v31  ;;  %v629_v44 = vpop.f32.mrb[1].mxu1  ;;  %865 = vmatprep.subr.msk.bf16.mxu0 %vm477_vm2, %v638_v40 }
 0x1e2   : > { %v630_v45 = vpop.f32.mrb[2].mxu1  ;;  %664 = vmatpush1.bf16.msra.mxu0 %v655_v42 }
 0x1e3   : > { %v635_v47 = vmax.f32 %v628_v43, 0.0  ;;  %v631_v48 = vpop.f32.mrb[3].mxu1 }
 0x1e5   : > { %v639_v49 = vpack.c.bf16 %v635_v47, %v635_v47  ;;  %866 = vmatmul.mubr.msk.bf16.vlgmr.msra.gmra.mrb[4].mxu0 %vm650_vm11, %v636_v46 }
 0x1e7   : > { %v661_v50 = vsel %vm477_vm2, %v639_v49, 0 }
 0x1e8   : > { %876 = vmatpush3.bf16.msra.mxu1 %v661_v50 }
 0x1eb   : > { %878 = vmatmul.mubr.msk.bf16.vlgmr.msra.gmra.mrb[4].mxu1 %vm650_vm11, %v636_v46 }
 0x2b8   : > { %v697_v58 = vpop.f32.mrb[4].mxu0 }
 0x2b9   : > { %v698_v60 = vadd.f32 %v697_v58, %v649_v57  ;;  %v699_v61 = vpop.f32.mrb[5].mxu0 }
 0x2ba   : > { %v700_v62 = vadd.f32 %v699_v61, %v649_v57  ;;  %v701_v63 = vpop.f32.mrb[6].mxu0 }
 0x2bb   : > { %vm744_vm12 = vcmp.gt.f32.partialorder %v698_v60, 0.0  ;;  %v702_v0 = vpop.f32.mrb[7].mxu0 }
 0x2bc   : > { %v868_v2 = vsel %vm744_vm12, 1.0, %v940_v30  ;;  %vm745_vm13 = vcmp.gt.f32.partialorder %v700_v62, 0.0 }
 0x2bd   : > { %v869_v4 = vsel %vm745_vm13, 1.0, %v940_v30 }
 0x2be   : > { %v756_v5 = vcombine.low %v868_v2, %v869_v4  ;;  %v738_v6 = vpop.f32.mrb[4].mxu1 }
 0x2bf   : > { %v739_v7 = vadd.f32 %v738_v6, %v649_v57  ;;  %v879_v8 = vpop.f32.mrb[5].mxu1 }
 0x2c0   : > { %v741_v9 = vpop.f32.mrb[6].mxu1  ;;  %v763_v10 = vrot.slane %v756_v5, %v762_v3 }
 0x2c1   : > { %vm746_vm14 = vcmp.gt.f32.partialorder %v739_v7, 0.0  ;;  %v880_v11 = vpop.f32.mrb[7].mxu1 }
 0x2c2   : > { %v870_v12 = vsel %vm746_vm14, 1.0, %v940_v30 }
 0x2c3   : > { %v770_v13 = vrot.slane %v870_v12, %v762_v3 }
 0x2c5   : > { %v771_v14 = vcombine.low %v763_v10, %v770_v13 }
 0x2c7   : > { %v778_v15 = vrot.slane %v771_v14, %v762_v3 }
 0x2c9   : > { %784 = vst.msk [vmem:[%s224_s17] sm:$0x7] %vm782_vm15, %v778_v15 }
 0x2ca PF: > { %s17_s20 = sadd.s32 1, %s929_s20  }
 0x2cb   : > { %p14_p4 = scmp.ge.s32.totalorder %s17_s20, 4  }
 0x2cd   :  { %16 = sbr.rel (!%p14_p4) target bundleno = 3 (0x3), region = 70 }

</bundles_post_ra>
